<compile_context>
chip_gen: v5e
topology: v5e:2x2
jax: 0.10.0
libtpu: 0.0.40
codegen_flags: <defaults>
</compile_context>

<pallas_src>
import functools

import jax
import jax.numpy as jnp
from jax.experimental import pallas as pl
from jax.experimental.pallas import tpu as pltpu

VMEM_SPEC = pl.BlockSpec(memory_space=pltpu.MemorySpace.VMEM)


# ----------------------------------------------------------------------------
# Fused forward kernel.
# ----------------------------------------------------------------------------
def _fused_forward_kernel(
    x_ref,                                    # (T*BP, 2F) bf16: [x_fwd | x_rev]
    g1_wih_ref,                               # (2F, 6H1) bf16, gate-major [rf rb zf zb nf nb]
    g1_whh_ref,                               # (2H1, 6H1) bf16, block-diag per direction
    g1_bi_ref,                                # (1, 6H1) f32, b_ih (+ b_hh for r,z) folded
    g1_bhn_ref,                               # (1, 2H1) f32, b_hh of n-gate [fwd | bwd]
    ln1_g_ref, ln1_b_ref,                     # (1, 2H1) f32
    g2_wih_ref,                               # (2H1, 3H2) bf16
    g2_whh_ref,                               # (H2, 3H2) bf16
    g2_bi_ref,                                # (1, 3H2) f32
    g2_bhn_ref,                               # (1, H2) f32
    ln2_g_ref, ln2_b_ref,                     # (1, H2) f32
    d1_w_ref, d1_b_ref,                       # (H2, D) bf16, (1, D) f32
    d2_w_ref, d2_b_ref,                       # (D, 1) bf16, (1, 1) f32
    out_ref,                                  # (BP, 1) f32
    h1_scr,                                   # VMEM scratch (T*BP, 2H1) f32
    *, T, BP,
):
    H1 = g1_bhn_ref.shape[1] // 2
    H2 = g2_whh_ref.shape[0]
    bf16 = jnp.bfloat16

    # ---------------- GRU1 (bidirectional, directions fused) ----------------
    # Input projection for both directions & all timesteps: one MXU call.
    gi1 = jnp.dot(x_ref[...], g1_wih_ref[...],
                  preferred_element_type=jnp.float32) + g1_bi_ref[...]   # (T*BP, 6H1)

    g1_whh = g1_whh_ref[...]
    bhn1 = jnp.broadcast_to(g1_bhn_ref[...], (BP, 2 * H1))               # hoisted broadcast

    h = jnp.zeros((BP, 2 * H1), jnp.float32)                             # [h_fwd | h_bwd]
    for p in range(T):                                                   # static unroll
        lo = p * BP                                                      # 8-row aligned
        gi = gi1[lo:lo + BP, :]
        gh = jnp.dot(h.astype(bf16), g1_whh,
                     preferred_element_type=jnp.float32)                 # (BP, 6H1)
        rz = jax.nn.sigmoid(gi[:, :4 * H1] + gh[:, :4 * H1])             # one EUP pass
        r = rz[:, :2 * H1]
        z = rz[:, 2 * H1:4 * H1]
        n = jnp.tanh(gi[:, 4 * H1:] + r * (gh[:, 4 * H1:] + bhn1))
        h = (1.0 - z) * n + z * h
        # fwd half is GRU1 output at time p; bwd half is output at time T-1-p.
        h1_scr[lo:lo + BP, 0:H1] = h[:, 0:H1]
        rlo = (T - 1 - p) * BP
        h1_scr[rlo:rlo + BP, H1:2 * H1] = h[:, H1:2 * H1]

    # ---------------- LayerNorm1 (eps = 1e-5); dropout1 = identity ----------
    h1 = h1_scr[...]                                                     # (T*BP, 2H1)
    mu1 = jnp.mean(h1, axis=-1, keepdims=True)
    var1 = jnp.mean((h1 - mu1) ** 2, axis=-1, keepdims=True)
    h1 = (h1 - mu1) * jax.lax.rsqrt(var1 + 1e-5) * ln1_g_ref[...] + ln1_b_ref[...]

    # ---------------- GRU2 (unidirectional, only final hidden kept) ---------
    gi2 = jnp.dot(h1.astype(bf16), g2_wih_ref[...],
                  preferred_element_type=jnp.float32) + g2_bi_ref[...]   # (T*BP, 3H2)
    g2_whh = g2_whh_ref[...]
    bhn2 = jnp.broadcast_to(g2_bhn_ref[...], (BP, H2))

    h2 = jnp.zeros((BP, H2), jnp.float32)
    for p in range(T):
        lo = p * BP
        gi = gi2[lo:lo + BP, :]
        gh = jnp.dot(h2.astype(bf16), g2_whh,
                     preferred_element_type=jnp.float32)                 # (BP, 3H2)
        rz = jax.nn.sigmoid(gi[:, :2 * H2] + gh[:, :2 * H2])
        r = rz[:, :H2]
        z = rz[:, H2:2 * H2]
        n = jnp.tanh(gi[:, 2 * H2:] + r * (gh[:, 2 * H2:] + bhn2))
        h2 = (1.0 - z) * n + z * h2

    # ---------------- LayerNorm2 -> Dense1+ReLU -> Dense2 -------------------
    mu2 = jnp.mean(h2, axis=-1, keepdims=True)
    var2 = jnp.mean((h2 - mu2) ** 2, axis=-1, keepdims=True)
    h2 = (h2 - mu2) * jax.lax.rsqrt(var2 + 1e-5) * ln2_g_ref[...] + ln2_b_ref[...]
    # dropout2: identity in eval mode.
    d1 = jnp.dot(h2.astype(bf16), d1_w_ref[...],
                 preferred_element_type=jnp.float32) + d1_b_ref[...]
    d1 = jnp.maximum(d1, 0.0)
    out_ref[...] = jnp.dot(d1.astype(bf16), d2_w_ref[...],
                           preferred_element_type=jnp.float32) + d2_b_ref[...]


# ----------------------------------------------------------------------------
# Wrapper: layout work (transpose / batch pad / time reverse / lane concat)
# done in XLA, then one pallas_call.
# TODO(synk): for many independent sequences add a leading "parallel" grid axis
#             (occupies v7x's second TensorCore); unnecessary for one sequence.
# ----------------------------------------------------------------------------
@jax.jit
def forward(params, x):
    p = params
    B, T, F = x.shape
    BP = 8                                                  # sublane-aligned batch pad
    H1 = p['g1_bhn'].shape[1] // 2

    xt = jnp.transpose(x, (1, 0, 2))                        # (T, B, F)
    xt = jnp.pad(xt, ((0, 0), (0, BP - B), (0, 0)))         # (T, BP, F)
    x_comb = jnp.concatenate([xt, xt[::-1]], axis=-1)       # (T, BP, 2F): [fwd | rev]
    x_comb = x_comb.reshape(T * BP, 2 * F).astype(jnp.bfloat16)

    out = pl.pallas_call(
        functools.partial(_fused_forward_kernel, T=T, BP=BP),
        out_shape=jax.ShapeDtypeStruct((BP, 1), jnp.float32),
        in_specs=[VMEM_SPEC] * 17,
        out_specs=VMEM_SPEC,
        scratch_shapes=[pltpu.VMEM((T * BP, 2 * H1), jnp.float32)],
    )(x_comb,
      p['g1_wih'], p['g1_whh'], p['g1_bi'], p['g1_bhn'],
      p['ln1_g'], p['ln1_b'],
      p['g2_wih'], p['g2_whh'], p['g2_bi'], p['g2_bhn'],
      p['ln2_g'], p['ln2_b'],
      p['d1_w'], p['d1_b'],
      p['d2_w'], p['d2_b'])
    return out[:B]


# ----------------------------------------------------------------------------
# Parameter init: raw PyTorch-layout weights + one-time kernel-layout build.
# ----------------------------------------------------------------------------
def _gate_cols(w, h):
    """(3h, in) torch weight -> per-gate (in, h) column blocks (r, z, n)."""
    wt = jnp.transpose(w)
    return wt[:, 0:h], wt[:, h:2 * h], wt[:, 2 * h:3 * h]


def _gate_vec(b, h):
    return b[0:h], b[h:2 * h], b[2 * h:3 * h]


def build_kernel_params(raw, F, H1, H2, D):
    bf = jnp.bfloat16
    f, bwd, g2 = raw['g1f'], raw['g1b'], raw['g2']

    # --- GRU1: fused bidirectional input projection (2F, 6H1) ---
    rf, zf, nf = _gate_cols(f['w_ih'], H1)
    rb, zb, nb = _gate_cols(bwd['w_ih'], H1)
    Zi = jnp.zeros((F, H1), jnp.float32)
    g1_wih = jnp.concatenate([
        jnp.concatenate([rf, Zi, zf, Zi, nf, Zi], axis=1),    # rows for x_fwd
        jnp.concatenate([Zi, rb, Zi, zb, Zi, nb], axis=1),    # rows for x_rev
    ], axis=0)

    # --- GRU1: block-diagonal recurrent weight (2H1, 6H1) ---
    rhf, zhf, nhf = _gate_cols(f['w_hh'], H1)
    rhb, zhb, nhb = _gate_cols(bwd['w_hh'], H1)
    Zh = jnp.zeros((H1, H1), jnp.float32)
    g1_whh = jnp.concatenate([
        jnp.concatenate([rhf, Zh, zhf, Zh, nhf, Zh], axis=1),  # rows for h_fwd
        jnp.concatenate([Zh, rhb, Zh, zhb, Zh, nhb], axis=1),  # rows for h_bwd
    ], axis=0)

    # --- GRU1 biases: b_ih (+ b_hh for r,z) folded; b_hh_n kept separate ---
    birf, bizf, binf = _gate_vec(f['b_ih'], H1)
    bhrf, bhzf, bhnf = _gate_vec(f['b_hh'], H1)
    birb, bizb, binb = _gate_vec(bwd['b_ih'], H1)
    bhrb, bhzb, bhnb = _gate_vec(bwd['b_hh'], H1)
    g1_bi = jnp.concatenate([birf + bhrf, birb + bhrb,
                             bizf + bhzf, bizb + bhzb,
                             binf, binb]).reshape(1, 6 * H1)
    g1_bhn = jnp.concatenate([bhnf, bhnb]).reshape(1, 2 * H1)

    # --- GRU2: fused per-gate weights (r|z|n columns) ---
    g2_wih = jnp.transpose(g2['w_ih'])                        # (2H1, 3H2)
    g2_whh = jnp.transpose(g2['w_hh'])                        # (H2, 3H2)
    bir, biz, bin_ = _gate_vec(g2['b_ih'], H2)
    bhr, bhz, bhn = _gate_vec(g2['b_hh'], H2)
    g2_bi = jnp.concatenate([bir + bhr, biz + bhz, bin_]).reshape(1, 3 * H2)
    g2_bhn = bhn.reshape(1, H2)

    return {
        'g1_wih': g1_wih.astype(bf), 'g1_whh': g1_whh.astype(bf),
        'g1_bi': g1_bi, 'g1_bhn': g1_bhn,
        'ln1_g': raw['ln1_g'].reshape(1, 2 * H1),
        'ln1_b': raw['ln1_b'].reshape(1, 2 * H1),
        'g2_wih': g2_wih.astype(bf), 'g2_whh': g2_whh.astype(bf),
        'g2_bi': g2_bi, 'g2_bhn': g2_bhn,
        'ln2_g': raw['ln2_g'].reshape(1, H2),
        'ln2_b': raw['ln2_b'].reshape(1, H2),
        'd1_w': jnp.transpose(raw['d1_w']).astype(bf),        # (H2, D)
        'd1_b': raw['d1_b'].reshape(1, D),
        'd2_w': jnp.transpose(raw['d2_w']).astype(bf),        # (D, 1)
        'd2_b': raw['d2_b'].reshape(1, 1),
    }


def init_params(key, n_features, h1, h2, dense_units):
    keys = iter(jax.random.split(key, 32))

    def uni(shape, bound):
        return jax.random.uniform(next(keys), shape, jnp.float32, -bound, bound)

    def gru_raw(in_dim, h):
        k = 1.0 / float(h) ** 0.5
        return dict(w_ih=uni((3 * h, in_dim), k), w_hh=uni((3 * h, h), k),
                    b_ih=uni((3 * h,), k), b_hh=uni((3 * h,), k))

    raw = {
        'g1f': gru_raw(n_features, h1),
        'g1b': gru_raw(n_features, h1),
        'g2': gru_raw(2 * h1, h2),
    }
    kd1 = 1.0 / float(h2) ** 0.5
    kd2 = 1.0 / float(dense_units) ** 0.5
    raw['d1_w'] = uni((dense_units, h2), kd1)
    raw['d1_b'] = uni((dense_units,), kd1)
    raw['d2_w'] = uni((1, dense_units), kd2)
    raw['d2_b'] = uni((1,), kd2)
    raw['ln1_g'] = jnp.ones((2 * h1,), jnp.float32)
    raw['ln1_b'] = jnp.zeros((2 * h1,), jnp.float32)
    raw['ln2_g'] = jnp.ones((h2,), jnp.float32)
    raw['ln2_b'] = jnp.zeros((h2,), jnp.float32)

    params = build_kernel_params(raw, n_features, h1, h2, dense_units)
    return params, raw


# ----------------------------------------------------------------------------
# Pure-JAX reference (standard per-gate formulation, raw torch-layout weights).
# Mirrors the kernel's bf16 matmul inputs / f32 accumulation so the comparison
# isolates the fused-layout bookkeeping.
# ----------------------------------------------------------------------------
def _bdot(a, b):
    return jnp.dot(a.astype(jnp.bfloat16), b.astype(jnp.bfloat16),
                   preferred_element_type=jnp.float32)


def forward_reference(raw, x):
    B, T, _ = x.shape

    def gru_dir(seq, p, reverse):
        H = p['w_hh'].shape[1]
        h = jnp.zeros((B, H), jnp.float32)
        outs = [None] * T
        order = range(T - 1, -1, -1) if reverse else range(T)
        for t in order:
            gi = _bdot(seq[t], jnp.transpose(p['w_ih'])) + p['b_ih']
            gh = _bdot(h, jnp.transpose(p['w_hh'])) + p['b_hh']
            r = jax.nn.sigmoid(gi[:, :H] + gh[:, :H])
            z = jax.nn.sigmoid(gi[:, H:2 * H] + gh[:, H:2 * H])
            n = jnp.tanh(gi[:, 2 * H:] + r * gh[:, 2 * H:])
            h = (1.0 - z) * n + z * h
            outs[t] = h
        return jnp.stack(outs, axis=0), h

    def ln(v, g, b):
        mu = jnp.mean(v, axis=-1, keepdims=True)
        var = jnp.mean((v - mu) ** 2, axis=-1, keepdims=True)
        return (v - mu) * jax.lax.rsqrt(var + 1e-5) * g + b

    xt = jnp.transpose(x, (1, 0, 2))
    of, _ = gru_dir(xt, raw['g1f'], False)
    ob, _ = gru_dir(xt, raw['g1b'], True)
    h1 = ln(jnp.concatenate([of, ob], axis=-1), raw['ln1_g'], raw['ln1_b'])
    _, h2 = gru_dir(h1, raw['g2'], False)
    h2 = ln(h2, raw['ln2_g'], raw['ln2_b'])
    d1 = jnp.maximum(_bdot(h2, jnp.transpose(raw['d1_w'])) + raw['d1_b'], 0.0)
    return _bdot(d1, jnp.transpose(raw['d2_w'])) + raw['d2_b']


if __name__ == "__main__":
    B, T, F = 2, 8, 8            # batch, past_steps, n_features
    H1, H2, DENSE = 32, 32, 32   # gru_units_1, gru_units_2, dense_units

    root = jax.random.PRNGKey(0)
    kx, kp = jax.random.split(root)
    x = jax.random.normal(kx, (B, T, F), jnp.float32)
    params, raw = init_params(kp, F, H1, H2, DENSE)

    out = forward(params, x)
    out = jax.block_until_ready(out)
    assert out.shape == (B, 1), out.shape
    assert out.dtype == jnp.float32

    ref = forward_reference(raw, x)
    assert bool(jnp.allclose(out, ref, rtol=1e-2, atol=1e-2)), (out, ref)
    print("KERNEL_OK")
</pallas_src>

<mosaic_0001>
module attributes {stable_mosaic.version = 11 : i64} {
  func.func @_fused_forward_kernel(%arg0: memref<64x16xbf16, #tpu.memory_space<vmem>>, %arg1: memref<16x192xbf16, #tpu.memory_space<vmem>>, %arg2: memref<64x192xbf16, #tpu.memory_space<vmem>>, %arg3: memref<1x192xf32, #tpu.memory_space<vmem>>, %arg4: memref<1x64xf32, #tpu.memory_space<vmem>>, %arg5: memref<1x64xf32, #tpu.memory_space<vmem>>, %arg6: memref<1x64xf32, #tpu.memory_space<vmem>>, %arg7: memref<64x96xbf16, #tpu.memory_space<vmem>>, %arg8: memref<32x96xbf16, #tpu.memory_space<vmem>>, %arg9: memref<1x96xf32, #tpu.memory_space<vmem>>, %arg10: memref<1x32xf32, #tpu.memory_space<vmem>>, %arg11: memref<1x32xf32, #tpu.memory_space<vmem>>, %arg12: memref<1x32xf32, #tpu.memory_space<vmem>>, %arg13: memref<32x32xbf16, #tpu.memory_space<vmem>>, %arg14: memref<1x32xf32, #tpu.memory_space<vmem>>, %arg15: memref<32x1xbf16, #tpu.memory_space<vmem>>, %arg16: memref<1x1xf32, #tpu.memory_space<vmem>>, %arg17: memref<8x1xf32, #tpu.memory_space<vmem>>, %arg18: memref<64x64xf32, #tpu.memory_space<vmem>>) attributes {dimension_semantics = [], scalar_prefetch = 0 : i64, scratch_operands = 1 : i64, tpu.core_type = #tpu.core_type<tc>} {
    %c0 = arith.constant 0 : index
    %c0_0 = arith.constant 0 : index
    %0 = vector.load %arg0[%c0, %c0_0] : memref<64x16xbf16, #tpu.memory_space<vmem>>, vector<64x16xbf16>
    %c0_1 = arith.constant 0 : index
    %c0_2 = arith.constant 0 : index
    %1 = vector.load %arg1[%c0_1, %c0_2] : memref<16x192xbf16, #tpu.memory_space<vmem>>, vector<16x192xbf16>
    %cst = arith.constant dense<0.000000e+00> : vector<64x192xf32>
    %2 = tpu.matmul %0, %1, %cst {dimension_numbers = #tpu.dot_dimension_numbers<[1], [0], [0], [1], [0, 0, 1, 1], [], []>} : vector<64x16xbf16>, vector<16x192xbf16>, vector<64x192xf32> -> vector<64x192xf32>
    %c0_3 = arith.constant 0 : index
    %c0_4 = arith.constant 0 : index
    %3 = vector.load %arg3[%c0_3, %c0_4] : memref<1x192xf32, #tpu.memory_space<vmem>>, vector<1x192xf32>
    %4 = vector.broadcast %3 : vector<1x192xf32> to vector<64x192xf32>
    %5 = arith.addf %2, %4 : vector<64x192xf32>
    %c0_5 = arith.constant 0 : index
    %c0_6 = arith.constant 0 : index
    %6 = vector.load %arg2[%c0_5, %c0_6] : memref<64x192xbf16, #tpu.memory_space<vmem>>, vector<64x192xbf16>
    %c0_7 = arith.constant 0 : index
    %c0_8 = arith.constant 0 : index
    %7 = vector.load %arg4[%c0_7, %c0_8] : memref<1x64xf32, #tpu.memory_space<vmem>>, vector<1x64xf32>
    %8 = vector.shape_cast %7 : vector<1x64xf32> to vector<1x64xf32>
    %9 = vector.broadcast %8 : vector<1x64xf32> to vector<8x64xf32>
    %cst_9 = arith.constant 0.000000e+00 : f32
    %10 = vector.broadcast %cst_9 : f32 to vector<8x64xf32>
    %11 = vector.extract_strided_slice %5 {offsets = [0, 0], sizes = [8, 192], strides = [1, 1]} : vector<64x192xf32> to vector<8x192xf32>
    %12 = arith.truncf %10 : vector<8x64xf32> to vector<8x64xbf16>
    %cst_10 = arith.constant dense<0.000000e+00> : vector<8x192xf32>
    %13 = tpu.matmul %12, %6, %cst_10 {dimension_numbers = #tpu.dot_dimension_numbers<[1], [0], [0], [1], [0, 0, 1, 1], [], []>} : vector<8x64xbf16>, vector<64x192xbf16>, vector<8x192xf32> -> vector<8x192xf32>
    %14 = vector.extract_strided_slice %11 {offsets = [0, 0], sizes = [8, 128], strides = [1, 1]} : vector<8x192xf32> to vector<8x128xf32>
    %15 = vector.extract_strided_slice %13 {offsets = [0, 0], sizes = [8, 128], strides = [1, 1]} : vector<8x192xf32> to vector<8x128xf32>
    %16 = arith.addf %14, %15 : vector<8x128xf32>
    %17 = arith.negf %16 : vector<8x128xf32>
    %18 = math.exp %17 : vector<8x128xf32>
    %cst_11 = arith.constant 1.000000e+00 : f32
    %19 = vector.broadcast %cst_11 : f32 to vector<8x128xf32>
    %20 = arith.addf %19, %18 : vector<8x128xf32>
    %21 = arith.divf %19, %20 : vector<8x128xf32>
    %22 = vector.extract_strided_slice %21 {offsets = [0, 0], sizes = [8, 64], strides = [1, 1]} : vector<8x128xf32> to vector<8x64xf32>
    %23 = vector.extract_strided_slice %21 {offsets = [0, 64], sizes = [8, 64], strides = [1, 1]} : vector<8x128xf32> to vector<8x64xf32>
    %24 = vector.extract_strided_slice %11 {offsets = [0, 128], sizes = [8, 64], strides = [1, 1]} : vector<8x192xf32> to vector<8x64xf32>
    %25 = vector.extract_strided_slice %13 {offsets = [0, 128], sizes = [8, 64], strides = [1, 1]} : vector<8x192xf32> to vector<8x64xf32>
    %26 = arith.addf %25, %9 : vector<8x64xf32>
    %27 = arith.mulf %22, %26 : vector<8x64xf32>
    %28 = arith.addf %24, %27 : vector<8x64xf32>
    %29 = math.tanh %28 : vector<8x64xf32>
    %cst_12 = arith.constant 1.000000e+00 : f32
    %30 = vector.broadcast %cst_12 : f32 to vector<8x64xf32>
    %31 = arith.subf %30, %23 : vector<8x64xf32>
    %32 = arith.mulf %31, %29 : vector<8x64xf32>
    %33 = arith.mulf %23, %10 : vector<8x64xf32>
    %34 = arith.addf %32, %33 : vector<8x64xf32>
    %35 = vector.extract_strided_slice %34 {offsets = [0, 0], sizes = [8, 32], strides = [1, 1]} : vector<8x64xf32> to vector<8x32xf32>
    %c0_13 = arith.constant 0 : index
    %c0_14 = arith.constant 0 : index
    %36 = vector.load %arg18[%c0_13, %c0_14] : memref<64x64xf32, #tpu.memory_space<vmem>>, vector<8x32xf32>
    tpu.vector_store %arg18[%c0_13, %c0_14], %35 {strides = array<i32>} : memref<64x64xf32, #tpu.memory_space<vmem>>, vector<8x32xf32>,
    %37 = vector.extract_strided_slice %34 {offsets = [0, 32], sizes = [8, 32], strides = [1, 1]} : vector<8x64xf32> to vector<8x32xf32>
    %c56 = arith.constant 56 : index
    %c32 = arith.constant 32 : index
    %38 = vector.load %arg18[%c56, %c32] : memref<64x64xf32, #tpu.memory_space<vmem>>, vector<8x32xf32>
    tpu.vector_store %arg18[%c56, %c32], %37 {strides = array<i32>} : memref<64x64xf32, #tpu.memory_space<vmem>>, vector<8x32xf32>,
    %39 = vector.extract_strided_slice %5 {offsets = [8, 0], sizes = [8, 192], strides = [1, 1]} : vector<64x192xf32> to vector<8x192xf32>
    %40 = arith.truncf %34 : vector<8x64xf32> to vector<8x64xbf16>
    %cst_15 = arith.constant dense<0.000000e+00> : vector<8x192xf32>
    %41 = tpu.matmul %40, %6, %cst_15 {dimension_numbers = #tpu.dot_dimension_numbers<[1], [0], [0], [1], [0, 0, 1, 1], [], []>} : vector<8x64xbf16>, vector<64x192xbf16>, vector<8x192xf32> -> vector<8x192xf32>
    %42 = vector.extract_strided_slice %39 {offsets = [0, 0], sizes = [8, 128], strides = [1, 1]} : vector<8x192xf32> to vector<8x128xf32>
    %43 = vector.extract_strided_slice %41 {offsets = [0, 0], sizes = [8, 128], strides = [1, 1]} : vector<8x192xf32> to vector<8x128xf32>
    %44 = arith.addf %42, %43 : vector<8x128xf32>
    %45 = arith.negf %44 : vector<8x128xf32>
    %46 = math.exp %45 : vector<8x128xf32>
    %cst_16 = arith.constant 1.000000e+00 : f32
    %47 = vector.broadcast %cst_16 : f32 to vector<8x128xf32>
    %48 = arith.addf %47, %46 : vector<8x128xf32>
    %49 = arith.divf %47, %48 : vector<8x128xf32>
    %50 = vector.extract_strided_slice %49 {offsets = [0, 0], sizes = [8, 64], strides = [1, 1]} : vector<8x128xf32> to vector<8x64xf32>
    %51 = vector.extract_strided_slice %49 {offsets = [0, 64], sizes = [8, 64], strides = [1, 1]} : vector<8x128xf32> to vector<8x64xf32>
    %52 = vector.extract_strided_slice %39 {offsets = [0, 128], sizes = [8, 64], strides = [1, 1]} : vector<8x192xf32> to vector<8x64xf32>
    %53 = vector.extract_strided_slice %41 {offsets = [0, 128], sizes = [8, 64], strides = [1, 1]} : vector<8x192xf32> to vector<8x64xf32>
    %54 = arith.addf %53, %9 : vector<8x64xf32>
    %55 = arith.mulf %50, %54 : vector<8x64xf32>
    %56 = arith.addf %52, %55 : vector<8x64xf32>
    %57 = math.tanh %56 : vector<8x64xf32>
    %cst_17 = arith.constant 1.000000e+00 : f32
    %58 = vector.broadcast %cst_17 : f32 to vector<8x64xf32>
    %59 = arith.subf %58, %51 : vector<8x64xf32>
    %60 = arith.mulf %59, %57 : vector<8x64xf32>
    %61 = arith.mulf %51, %34 : vector<8x64xf32>
    %62 = arith.addf %60, %61 : vector<8x64xf32>
    %63 = vector.extract_strided_slice %62 {offsets = [0, 0], sizes = [8, 32], strides = [1, 1]} : vector<8x64xf32> to vector<8x32xf32>
    %c8 = arith.constant 8 : index
    %c0_18 = arith.constant 0 : index
    %64 = vector.load %arg18[%c8, %c0_18] : memref<64x64xf32, #tpu.memory_space<vmem>>, vector<8x32xf32>
    tpu.vector_store %arg18[%c8, %c0_18], %63 {strides = array<i32>} : memref<64x64xf32, #tpu.memory_space<vmem>>, vector<8x32xf32>,
    %65 = vector.extract_strided_slice %62 {offsets = [0, 32], sizes = [8, 32], strides = [1, 1]} : vector<8x64xf32> to vector<8x32xf32>
    %c48 = arith.constant 48 : index
    %c32_19 = arith.constant 32 : index
    %66 = vector.load %arg18[%c48, %c32_19] : memref<64x64xf32, #tpu.memory_space<vmem>>, vector<8x32xf32>
    tpu.vector_store %arg18[%c48, %c32_19], %65 {strides = array<i32>} : memref<64x64xf32, #tpu.memory_space<vmem>>, vector<8x32xf32>,
    %67 = vector.extract_strided_slice %5 {offsets = [16, 0], sizes = [8, 192], strides = [1, 1]} : vector<64x192xf32> to vector<8x192xf32>
    %68 = arith.truncf %62 : vector<8x64xf32> to vector<8x64xbf16>
    %cst_20 = arith.constant dense<0.000000e+00> : vector<8x192xf32>
    %69 = tpu.matmul %68, %6, %cst_20 {dimension_numbers = #tpu.dot_dimension_numbers<[1], [0], [0], [1], [0, 0, 1, 1], [], []>} : vector<8x64xbf16>, vector<64x192xbf16>, vector<8x192xf32> -> vector<8x192xf32>
    %70 = vector.extract_strided_slice %67 {offsets = [0, 0], sizes = [8, 128], strides = [1, 1]} : vector<8x192xf32> to vector<8x128xf32>
    %71 = vector.extract_strided_slice %69 {offsets = [0, 0], sizes = [8, 128], strides = [1, 1]} : vector<8x192xf32> to vector<8x128xf32>
    %72 = arith.addf %70, %71 : vector<8x128xf32>
    %73 = arith.negf %72 : vector<8x128xf32>
    %74 = math.exp %73 : vector<8x128xf32>
    %cst_21 = arith.constant 1.000000e+00 : f32
    %75 = vector.broadcast %cst_21 : f32 to vector<8x128xf32>
    %76 = arith.addf %75, %74 : vector<8x128xf32>
    %77 = arith.divf %75, %76 : vector<8x128xf32>
    %78 = vector.extract_strided_slice %77 {offsets = [0, 0], sizes = [8, 64], strides = [1, 1]} : vector<8x128xf32> to vector<8x64xf32>
    %79 = vector.extract_strided_slice %77 {offsets = [0, 64], sizes = [8, 64], strides = [1, 1]} : vector<8x128xf32> to vector<8x64xf32>
    %80 = vector.extract_strided_slice %67 {offsets = [0, 128], sizes = [8, 64], strides = [1, 1]} : vector<8x192xf32> to vector<8x64xf32>
    %81 = vector.extract_strided_slice %69 {offsets = [0, 128], sizes = [8, 64], strides = [1, 1]} : vector<8x192xf32> to vector<8x64xf32>
    %82 = arith.addf %81, %9 : vector<8x64xf32>
    %83 = arith.mulf %78, %82 : vector<8x64xf32>
    %84 = arith.addf %80, %83 : vector<8x64xf32>
    %85 = math.tanh %84 : vector<8x64xf32>
    %cst_22 = arith.constant 1.000000e+00 : f32
    %86 = vector.broadcast %cst_22 : f32 to vector<8x64xf32>
    %87 = arith.subf %86, %79 : vector<8x64xf32>
    %88 = arith.mulf %87, %85 : vector<8x64xf32>
    %89 = arith.mulf %79, %62 : vector<8x64xf32>
    %90 = arith.addf %88, %89 : vector<8x64xf32>
    %91 = vector.extract_strided_slice %90 {offsets = [0, 0], sizes = [8, 32], strides = [1, 1]} : vector<8x64xf32> to vector<8x32xf32>
    %c16 = arith.constant 16 : index
    %c0_23 = arith.constant 0 : index
    %92 = vector.load %arg18[%c16, %c0_23] : memref<64x64xf32, #tpu.memory_space<vmem>>, vector<8x32xf32>
    tpu.vector_store %arg18[%c16, %c0_23], %91 {strides = array<i32>} : memref<64x64xf32, #tpu.memory_space<vmem>>, vector<8x32xf32>,
    %93 = vector.extract_strided_slice %90 {offsets = [0, 32], sizes = [8, 32], strides = [1, 1]} : vector<8x64xf32> to vector<8x32xf32>
    %c40 = arith.constant 40 : index
    %c32_24 = arith.constant 32 : index
    %94 = vector.load %arg18[%c40, %c32_24] : memref<64x64xf32, #tpu.memory_space<vmem>>, vector<8x32xf32>
    tpu.vector_store %arg18[%c40, %c32_24], %93 {strides = array<i32>} : memref<64x64xf32, #tpu.memory_space<vmem>>, vector<8x32xf32>,
    %95 = vector.extract_strided_slice %5 {offsets = [24, 0], sizes = [8, 192], strides = [1, 1]} : vector<64x192xf32> to vector<8x192xf32>
    %96 = arith.truncf %90 : vector<8x64xf32> to vector<8x64xbf16>
    %cst_25 = arith.constant dense<0.000000e+00> : vector<8x192xf32>
    %97 = tpu.matmul %96, %6, %cst_25 {dimension_numbers = #tpu.dot_dimension_numbers<[1], [0], [0], [1], [0, 0, 1, 1], [], []>} : vector<8x64xbf16>, vector<64x192xbf16>, vector<8x192xf32> -> vector<8x192xf32>
    %98 = vector.extract_strided_slice %95 {offsets = [0, 0], sizes = [8, 128], strides = [1, 1]} : vector<8x192xf32> to vector<8x128xf32>
    %99 = vector.extract_strided_slice %97 {offsets = [0, 0], sizes = [8, 128], strides = [1, 1]} : vector<8x192xf32> to vector<8x128xf32>
    %100 = arith.addf %98, %99 : vector<8x128xf32>
    %101 = arith.negf %100 : vector<8x128xf32>
    %102 = math.exp %101 : vector<8x128xf32>
    %cst_26 = arith.constant 1.000000e+00 : f32
    %103 = vector.broadcast %cst_26 : f32 to vector<8x128xf32>
    %104 = arith.addf %103, %102 : vector<8x128xf32>
    %105 = arith.divf %103, %104 : vector<8x128xf32>
    %106 = vector.extract_strided_slice %105 {offsets = [0, 0], sizes = [8, 64], strides = [1, 1]} : vector<8x128xf32> to vector<8x64xf32>
    %107 = vector.extract_strided_slice %105 {offsets = [0, 64], sizes = [8, 64], strides = [1, 1]} : vector<8x128xf32> to vector<8x64xf32>
    %108 = vector.extract_strided_slice %95 {offsets = [0, 128], sizes = [8, 64], strides = [1, 1]} : vector<8x192xf32> to vector<8x64xf32>
    %109 = vector.extract_strided_slice %97 {offsets = [0, 128], sizes = [8, 64], strides = [1, 1]} : vector<8x192xf32> to vector<8x64xf32>
    %110 = arith.addf %109, %9 : vector<8x64xf32>
    %111 = arith.mulf %106, %110 : vector<8x64xf32>
    %112 = arith.addf %108, %111 : vector<8x64xf32>
    %113 = math.tanh %112 : vector<8x64xf32>
    %cst_27 = arith.constant 1.000000e+00 : f32
    %114 = vector.broadcast %cst_27 : f32 to vector<8x64xf32>
    %115 = arith.subf %114, %107 : vector<8x64xf32>
    %116 = arith.mulf %115, %113 : vector<8x64xf32>
    %117 = arith.mulf %107, %90 : vector<8x64xf32>
    %118 = arith.addf %116, %117 : vector<8x64xf32>
    %119 = vector.extract_strided_slice %118 {offsets = [0, 0], sizes = [8, 32], strides = [1, 1]} : vector<8x64xf32> to vector<8x32xf32>
    %c24 = arith.constant 24 : index
    %c0_28 = arith.constant 0 : index
    %120 = vector.load %arg18[%c24, %c0_28] : memref<64x64xf32, #tpu.memory_space<vmem>>, vector<8x32xf32>
    tpu.vector_store %arg18[%c24, %c0_28], %119 {strides = array<i32>} : memref<64x64xf32, #tpu.memory_space<vmem>>, vector<8x32xf32>,
    %121 = vector.extract_strided_slice %118 {offsets = [0, 32], sizes = [8, 32], strides = [1, 1]} : vector<8x64xf32> to vector<8x32xf32>
    %c32_29 = arith.constant 32 : index
    %c32_30 = arith.constant 32 : index
    %122 = vector.load %arg18[%c32_29, %c32_30] : memref<64x64xf32, #tpu.memory_space<vmem>>, vector<8x32xf32>
    tpu.vector_store %arg18[%c32_29, %c32_30], %121 {strides = array<i32>} : memref<64x64xf32, #tpu.memory_space<vmem>>, vector<8x32xf32>,
    %123 = vector.extract_strided_slice %5 {offsets = [32, 0], sizes = [8, 192], strides = [1, 1]} : vector<64x192xf32> to vector<8x192xf32>
    %124 = arith.truncf %118 : vector<8x64xf32> to vector<8x64xbf16>
    %cst_31 = arith.constant dense<0.000000e+00> : vector<8x192xf32>
    %125 = tpu.matmul %124, %6, %cst_31 {dimension_numbers = #tpu.dot_dimension_numbers<[1], [0], [0], [1], [0, 0, 1, 1], [], []>} : vector<8x64xbf16>, vector<64x192xbf16>, vector<8x192xf32> -> vector<8x192xf32>
    %126 = vector.extract_strided_slice %123 {offsets = [0, 0], sizes = [8, 128], strides = [1, 1]} : vector<8x192xf32> to vector<8x128xf32>
    %127 = vector.extract_strided_slice %125 {offsets = [0, 0], sizes = [8, 128], strides = [1, 1]} : vector<8x192xf32> to vector<8x128xf32>
    %128 = arith.addf %126, %127 : vector<8x128xf32>
    %129 = arith.negf %128 : vector<8x128xf32>
    %130 = math.exp %129 : vector<8x128xf32>
    %cst_32 = arith.constant 1.000000e+00 : f32
    %131 = vector.broadcast %cst_32 : f32 to vector<8x128xf32>
    %132 = arith.addf %131, %130 : vector<8x128xf32>
    %133 = arith.divf %131, %132 : vector<8x128xf32>
    %134 = vector.extract_strided_slice %133 {offsets = [0, 0], sizes = [8, 64], strides = [1, 1]} : vector<8x128xf32> to vector<8x64xf32>
    %135 = vector.extract_strided_slice %133 {offsets = [0, 64], sizes = [8, 64], strides = [1, 1]} : vector<8x128xf32> to vector<8x64xf32>
    %136 = vector.extract_strided_slice %123 {offsets = [0, 128], sizes = [8, 64], strides = [1, 1]} : vector<8x192xf32> to vector<8x64xf32>
    %137 = vector.extract_strided_slice %125 {offsets = [0, 128], sizes = [8, 64], strides = [1, 1]} : vector<8x192xf32> to vector<8x64xf32>
    %138 = arith.addf %137, %9 : vector<8x64xf32>
    %139 = arith.mulf %134, %138 : vector<8x64xf32>
    %140 = arith.addf %136, %139 : vector<8x64xf32>
    %141 = math.tanh %140 : vector<8x64xf32>
    %cst_33 = arith.constant 1.000000e+00 : f32
    %142 = vector.broadcast %cst_33 : f32 to vector<8x64xf32>
    %143 = arith.subf %142, %135 : vector<8x64xf32>
    %144 = arith.mulf %143, %141 : vector<8x64xf32>
    %145 = arith.mulf %135, %118 : vector<8x64xf32>
    %146 = arith.addf %144, %145 : vector<8x64xf32>
    %147 = vector.extract_strided_slice %146 {offsets = [0, 0], sizes = [8, 32], strides = [1, 1]} : vector<8x64xf32> to vector<8x32xf32>
    %c32_34 = arith.constant 32 : index
    %c0_35 = arith.constant 0 : index
    %148 = vector.load %arg18[%c32_34, %c0_35] : memref<64x64xf32, #tpu.memory_space<vmem>>, vector<8x32xf32>
    tpu.vector_store %arg18[%c32_34, %c0_35], %147 {strides = array<i32>} : memref<64x64xf32, #tpu.memory_space<vmem>>, vector<8x32xf32>,
    %149 = vector.extract_strided_slice %146 {offsets = [0, 32], sizes = [8, 32], strides = [1, 1]} : vector<8x64xf32> to vector<8x32xf32>
    %c24_36 = arith.constant 24 : index
    %c32_37 = arith.constant 32 : index
    %150 = vector.load %arg18[%c24_36, %c32_37] : memref<64x64xf32, #tpu.memory_space<vmem>>, vector<8x32xf32>
    tpu.vector_store %arg18[%c24_36, %c32_37], %149 {strides = array<i32>} : memref<64x64xf32, #tpu.memory_space<vmem>>, vector<8x32xf32>,
    %151 = vector.extract_strided_slice %5 {offsets = [40, 0], sizes = [8, 192], strides = [1, 1]} : vector<64x192xf32> to vector<8x192xf32>
    %152 = arith.truncf %146 : vector<8x64xf32> to vector<8x64xbf16>
    %cst_38 = arith.constant dense<0.000000e+00> : vector<8x192xf32>
    %153 = tpu.matmul %152, %6, %cst_38 {dimension_numbers = #tpu.dot_dimension_numbers<[1], [0], [0], [1], [0, 0, 1, 1], [], []>} : vector<8x64xbf16>, vector<64x192xbf16>, vector<8x192xf32> -> vector<8x192xf32>
    %154 = vector.extract_strided_slice %151 {offsets = [0, 0], sizes = [8, 128], strides = [1, 1]} : vector<8x192xf32> to vector<8x128xf32>
    %155 = vector.extract_strided_slice %153 {offsets = [0, 0], sizes = [8, 128], strides = [1, 1]} : vector<8x192xf32> to vector<8x128xf32>
    %156 = arith.addf %154, %155 : vector<8x128xf32>
    %157 = arith.negf %156 : vector<8x128xf32>
    %158 = math.exp %157 : vector<8x128xf32>
    %cst_39 = arith.constant 1.000000e+00 : f32
    %159 = vector.broadcast %cst_39 : f32 to vector<8x128xf32>
    %160 = arith.addf %159, %158 : vector<8x128xf32>
    %161 = arith.divf %159, %160 : vector<8x128xf32>
    %162 = vector.extract_strided_slice %161 {offsets = [0, 0], sizes = [8, 64], strides = [1, 1]} : vector<8x128xf32> to vector<8x64xf32>
    %163 = vector.extract_strided_slice %161 {offsets = [0, 64], sizes = [8, 64], strides = [1, 1]} : vector<8x128xf32> to vector<8x64xf32>
    %164 = vector.extract_strided_slice %151 {offsets = [0, 128], sizes = [8, 64], strides = [1, 1]} : vector<8x192xf32> to vector<8x64xf32>
    %165 = vector.extract_strided_slice %153 {offsets = [0, 128], sizes = [8, 64], strides = [1, 1]} : vector<8x192xf32> to vector<8x64xf32>
    %166 = arith.addf %165, %9 : vector<8x64xf32>
    %167 = arith.mulf %162, %166 : vector<8x64xf32>
    %168 = arith.addf %164, %167 : vector<8x64xf32>
    %169 = math.tanh %168 : vector<8x64xf32>
    %cst_40 = arith.constant 1.000000e+00 : f32
    %170 = vector.broadcast %cst_40 : f32 to vector<8x64xf32>
    %171 = arith.subf %170, %163 : vector<8x64xf32>
    %172 = arith.mulf %171, %169 : vector<8x64xf32>
    %173 = arith.mulf %163, %146 : vector<8x64xf32>
    %174 = arith.addf %172, %173 : vector<8x64xf32>
    %175 = vector.extract_strided_slice %174 {offsets = [0, 0], sizes = [8, 32], strides = [1, 1]} : vector<8x64xf32> to vector<8x32xf32>
    %c40_41 = arith.constant 40 : index
    %c0_42 = arith.constant 0 : index
    %176 = vector.load %arg18[%c40_41, %c0_42] : memref<64x64xf32, #tpu.memory_space<vmem>>, vector<8x32xf32>
    tpu.vector_store %arg18[%c40_41, %c0_42], %175 {strides = array<i32>} : memref<64x64xf32, #tpu.memory_space<vmem>>, vector<8x32xf32>,
    %177 = vector.extract_strided_slice %174 {offsets = [0, 32], sizes = [8, 32], strides = [1, 1]} : vector<8x64xf32> to vector<8x32xf32>
    %c16_43 = arith.constant 16 : index
    %c32_44 = arith.constant 32 : index
    %178 = vector.load %arg18[%c16_43, %c32_44] : memref<64x64xf32, #tpu.memory_space<vmem>>, vector<8x32xf32>
    tpu.vector_store %arg18[%c16_43, %c32_44], %177 {strides = array<i32>} : memref<64x64xf32, #tpu.memory_space<vmem>>, vector<8x32xf32>,
    %179 = vector.extract_strided_slice %5 {offsets = [48, 0], sizes = [8, 192], strides = [1, 1]} : vector<64x192xf32> to vector<8x192xf32>
    %180 = arith.truncf %174 : vector<8x64xf32> to vector<8x64xbf16>
    %cst_45 = arith.constant dense<0.000000e+00> : vector<8x192xf32>
    %181 = tpu.matmul %180, %6, %cst_45 {dimension_numbers = #tpu.dot_dimension_numbers<[1], [0], [0], [1], [0, 0, 1, 1], [], []>} : vector<8x64xbf16>, vector<64x192xbf16>, vector<8x192xf32> -> vector<8x192xf32>
    %182 = vector.extract_strided_slice %179 {offsets = [0, 0], sizes = [8, 128], strides = [1, 1]} : vector<8x192xf32> to vector<8x128xf32>
    %183 = vector.extract_strided_slice %181 {offsets = [0, 0], sizes = [8, 128], strides = [1, 1]} : vector<8x192xf32> to vector<8x128xf32>
    %184 = arith.addf %182, %183 : vector<8x128xf32>
    %185 = arith.negf %184 : vector<8x128xf32>
    %186 = math.exp %185 : vector<8x128xf32>
    %cst_46 = arith.constant 1.000000e+00 : f32
    %187 = vector.broadcast %cst_46 : f32 to vector<8x128xf32>
    %188 = arith.addf %187, %186 : vector<8x128xf32>
    %189 = arith.divf %187, %188 : vector<8x128xf32>
    %190 = vector.extract_strided_slice %189 {offsets = [0, 0], sizes = [8, 64], strides = [1, 1]} : vector<8x128xf32> to vector<8x64xf32>
    %191 = vector.extract_strided_slice %189 {offsets = [0, 64], sizes = [8, 64], strides = [1, 1]} : vector<8x128xf32> to vector<8x64xf32>
    %192 = vector.extract_strided_slice %179 {offsets = [0, 128], sizes = [8, 64], strides = [1, 1]} : vector<8x192xf32> to vector<8x64xf32>
    %193 = vector.extract_strided_slice %181 {offsets = [0, 128], sizes = [8, 64], strides = [1, 1]} : vector<8x192xf32> to vector<8x64xf32>
    %194 = arith.addf %193, %9 : vector<8x64xf32>
    %195 = arith.mulf %190, %194 : vector<8x64xf32>
    %196 = arith.addf %192, %195 : vector<8x64xf32>
    %197 = math.tanh %196 : vector<8x64xf32>
    %cst_47 = arith.constant 1.000000e+00 : f32
    %198 = vector.broadcast %cst_47 : f32 to vector<8x64xf32>
    %199 = arith.subf %198, %191 : vector<8x64xf32>
    %200 = arith.mulf %199, %197 : vector<8x64xf32>
    %201 = arith.mulf %191, %174 : vector<8x64xf32>
    %202 = arith.addf %200, %201 : vector<8x64xf32>
    %203 = vector.extract_strided_slice %202 {offsets = [0, 0], sizes = [8, 32], strides = [1, 1]} : vector<8x64xf32> to vector<8x32xf32>
    %c48_48 = arith.constant 48 : index
    %c0_49 = arith.constant 0 : index
    %204 = vector.load %arg18[%c48_48, %c0_49] : memref<64x64xf32, #tpu.memory_space<vmem>>, vector<8x32xf32>
    tpu.vector_store %arg18[%c48_48, %c0_49], %203 {strides = array<i32>} : memref<64x64xf32, #tpu.memory_space<vmem>>, vector<8x32xf32>,
    %205 = vector.extract_strided_slice %202 {offsets = [0, 32], sizes = [8, 32], strides = [1, 1]} : vector<8x64xf32> to vector<8x32xf32>
    %c8_50 = arith.constant 8 : index
    %c32_51 = arith.constant 32 : index
    %206 = vector.load %arg18[%c8_50, %c32_51] : memref<64x64xf32, #tpu.memory_space<vmem>>, vector<8x32xf32>
    tpu.vector_store %arg18[%c8_50, %c32_51], %205 {strides = array<i32>} : memref<64x64xf32, #tpu.memory_space<vmem>>, vector<8x32xf32>,
    %207 = vector.extract_strided_slice %5 {offsets = [56, 0], sizes = [8, 192], strides = [1, 1]} : vector<64x192xf32> to vector<8x192xf32>
    %208 = arith.truncf %202 : vector<8x64xf32> to vector<8x64xbf16>
    %cst_52 = arith.constant dense<0.000000e+00> : vector<8x192xf32>
    %209 = tpu.matmul %208, %6, %cst_52 {dimension_numbers = #tpu.dot_dimension_numbers<[1], [0], [0], [1], [0, 0, 1, 1], [], []>} : vector<8x64xbf16>, vector<64x192xbf16>, vector<8x192xf32> -> vector<8x192xf32>
    %210 = vector.extract_strided_slice %207 {offsets = [0, 0], sizes = [8, 128], strides = [1, 1]} : vector<8x192xf32> to vector<8x128xf32>
    %211 = vector.extract_strided_slice %209 {offsets = [0, 0], sizes = [8, 128], strides = [1, 1]} : vector<8x192xf32> to vector<8x128xf32>
    %212 = arith.addf %210, %211 : vector<8x128xf32>
    %213 = arith.negf %212 : vector<8x128xf32>
    %214 = math.exp %213 : vector<8x128xf32>
    %cst_53 = arith.constant 1.000000e+00 : f32
    %215 = vector.broadcast %cst_53 : f32 to vector<8x128xf32>
    %216 = arith.addf %215, %214 : vector<8x128xf32>
    %217 = arith.divf %215, %216 : vector<8x128xf32>
    %218 = vector.extract_strided_slice %217 {offsets = [0, 0], sizes = [8, 64], strides = [1, 1]} : vector<8x128xf32> to vector<8x64xf32>
    %219 = vector.extract_strided_slice %217 {offsets = [0, 64], sizes = [8, 64], strides = [1, 1]} : vector<8x128xf32> to vector<8x64xf32>
    %220 = vector.extract_strided_slice %207 {offsets = [0, 128], sizes = [8, 64], strides = [1, 1]} : vector<8x192xf32> to vector<8x64xf32>
    %221 = vector.extract_strided_slice %209 {offsets = [0, 128], sizes = [8, 64], strides = [1, 1]} : vector<8x192xf32> to vector<8x64xf32>
    %222 = arith.addf %221, %9 : vector<8x64xf32>
    %223 = arith.mulf %218, %222 : vector<8x64xf32>
    %224 = arith.addf %220, %223 : vector<8x64xf32>
    %225 = math.tanh %224 : vector<8x64xf32>
    %cst_54 = arith.constant 1.000000e+00 : f32
    %226 = vector.broadcast %cst_54 : f32 to vector<8x64xf32>
    %227 = arith.subf %226, %219 : vector<8x64xf32>
    %228 = arith.mulf %227, %225 : vector<8x64xf32>
    %229 = arith.mulf %219, %202 : vector<8x64xf32>
    %230 = arith.addf %228, %229 : vector<8x64xf32>
    %231 = vector.extract_strided_slice %230 {offsets = [0, 0], sizes = [8, 32], strides = [1, 1]} : vector<8x64xf32> to vector<8x32xf32>
    %c56_55 = arith.constant 56 : index
    %c0_56 = arith.constant 0 : index
    %232 = vector.load %arg18[%c56_55, %c0_56] : memref<64x64xf32, #tpu.memory_space<vmem>>, vector<8x32xf32>
    tpu.vector_store %arg18[%c56_55, %c0_56], %231 {strides = array<i32>} : memref<64x64xf32, #tpu.memory_space<vmem>>, vector<8x32xf32>,
    %233 = vector.extract_strided_slice %230 {offsets = [0, 32], sizes = [8, 32], strides = [1, 1]} : vector<8x64xf32> to vector<8x32xf32>
    %c0_57 = arith.constant 0 : index
    %c32_58 = arith.constant 32 : index
    %234 = vector.load %arg18[%c0_57, %c32_58] : memref<64x64xf32, #tpu.memory_space<vmem>>, vector<8x32xf32>
    tpu.vector_store %arg18[%c0_57, %c32_58], %233 {strides = array<i32>} : memref<64x64xf32, #tpu.memory_space<vmem>>, vector<8x32xf32>,
    %c0_59 = arith.constant 0 : index
    %c0_60 = arith.constant 0 : index
    %235 = vector.load %arg18[%c0_59, %c0_60] : memref<64x64xf32, #tpu.memory_space<vmem>>, vector<64x64xf32>
    %cst_61 = arith.constant dense<0.000000e+00> : vector<64xf32>
    %236 = vector.multi_reduction <add>, %235, %cst_61 [1] : vector<64x64xf32> to vector<64xf32>
    %237 = vector.shape_cast %236 : vector<64xf32> to vector<64x1xf32>
    %cst_62 = arith.constant 6.400000e+01 : f32
    %238 = vector.broadcast %cst_62 : f32 to vector<64x1xf32>
    %239 = arith.divf %237, %238 : vector<64x1xf32>
    %240 = vector.broadcast %239 : vector<64x1xf32> to vector<64x64xf32>
    %241 = arith.subf %235, %240 : vector<64x64xf32>
    %242 = arith.mulf %241, %241 : vector<64x64xf32>
    %cst_63 = arith.constant dense<0.000000e+00> : vector<64xf32>
    %243 = vector.multi_reduction <add>, %242, %cst_63 [1] : vector<64x64xf32> to vector<64xf32>
    %244 = vector.shape_cast %243 : vector<64xf32> to vector<64x1xf32>
    %cst_64 = arith.constant 6.400000e+01 : f32
    %245 = vector.broadcast %cst_64 : f32 to vector<64x1xf32>
    %246 = arith.divf %244, %245 : vector<64x1xf32>
    %247 = vector.broadcast %239 : vector<64x1xf32> to vector<64x64xf32>
    %248 = arith.subf %235, %247 : vector<64x64xf32>
    %cst_65 = arith.constant 9.99999974E-6 : f32
    %249 = vector.broadcast %cst_65 : f32 to vector<64x1xf32>
    %250 = arith.addf %246, %249 : vector<64x1xf32>
    %251 = math.rsqrt %250 : vector<64x1xf32>
    %252 = vector.broadcast %251 : vector<64x1xf32> to vector<64x64xf32>
    %253 = arith.mulf %248, %252 : vector<64x64xf32>
    %c0_66 = arith.constant 0 : index
    %c0_67 = arith.constant 0 : index
    %254 = vector.load %arg5[%c0_66, %c0_67] : memref<1x64xf32, #tpu.memory_space<vmem>>, vector<1x64xf32>
    %255 = vector.broadcast %254 : vector<1x64xf32> to vector<64x64xf32>
    %256 = arith.mulf %253, %255 : vector<64x64xf32>
    %c0_68 = arith.constant 0 : index
    %c0_69 = arith.constant 0 : index
    %257 = vector.load %arg6[%c0_68, %c0_69] : memref<1x64xf32, #tpu.memory_space<vmem>>, vector<1x64xf32>
    %258 = vector.broadcast %257 : vector<1x64xf32> to vector<64x64xf32>
    %259 = arith.addf %256, %258 : vector<64x64xf32>
    %260 = arith.truncf %259 : vector<64x64xf32> to vector<64x64xbf16>
    %c0_70 = arith.constant 0 : index
    %c0_71 = arith.constant 0 : index
    %261 = vector.load %arg7[%c0_70, %c0_71] : memref<64x96xbf16, #tpu.memory_space<vmem>>, vector<64x96xbf16>
    %cst_72 = arith.constant dense<0.000000e+00> : vector<64x96xf32>
    %262 = tpu.matmul %260, %261, %cst_72 {dimension_numbers = #tpu.dot_dimension_numbers<[1], [0], [0], [1], [0, 0, 1, 1], [], []>} : vector<64x64xbf16>, vector<64x96xbf16>, vector<64x96xf32> -> vector<64x96xf32>
    %c0_73 = arith.constant 0 : index
    %c0_74 = arith.constant 0 : index
    %263 = vector.load %arg9[%c0_73, %c0_74] : memref<1x96xf32, #tpu.memory_space<vmem>>, vector<1x96xf32>
    %264 = vector.broadcast %263 : vector<1x96xf32> to vector<64x96xf32>
    %265 = arith.addf %262, %264 : vector<64x96xf32>
    %c0_75 = arith.constant 0 : index
    %c0_76 = arith.constant 0 : index
    %266 = vector.load %arg8[%c0_75, %c0_76] : memref<32x96xbf16, #tpu.memory_space<vmem>>, vector<32x96xbf16>
    %c0_77 = arith.constant 0 : index
    %c0_78 = arith.constant 0 : index
    %267 = vector.load %arg10[%c0_77, %c0_78] : memref<1x32xf32, #tpu.memory_space<vmem>>, vector<1x32xf32>
    %268 = vector.shape_cast %267 : vector<1x32xf32> to vector<1x32xf32>
    %269 = vector.broadcast %268 : vector<1x32xf32> to vector<8x32xf32>
    %cst_79 = arith.constant 0.000000e+00 : f32
    %270 = vector.broadcast %cst_79 : f32 to vector<8x32xf32>
    %271 = vector.extract_strided_slice %265 {offsets = [0, 0], sizes = [8, 96], strides = [1, 1]} : vector<64x96xf32> to vector<8x96xf32>
    %272 = arith.truncf %270 : vector<8x32xf32> to vector<8x32xbf16>
    %cst_80 = arith.constant dense<0.000000e+00> : vector<8x96xf32>
    %273 = tpu.matmul %272, %266, %cst_80 {dimension_numbers = #tpu.dot_dimension_numbers<[1], [0], [0], [1], [0, 0, 1, 1], [], []>} : vector<8x32xbf16>, vector<32x96xbf16>, vector<8x96xf32> -> vector<8x96xf32>
    %274 = vector.extract_strided_slice %271 {offsets = [0, 0], sizes = [8, 64], strides = [1, 1]} : vector<8x96xf32> to vector<8x64xf32>
    %275 = vector.extract_strided_slice %273 {offsets = [0, 0], sizes = [8, 64], strides = [1, 1]} : vector<8x96xf32> to vector<8x64xf32>
    %276 = arith.addf %274, %275 : vector<8x64xf32>
    %277 = arith.negf %276 : vector<8x64xf32>
    %278 = math.exp %277 : vector<8x64xf32>
    %cst_81 = arith.constant 1.000000e+00 : f32
    %279 = vector.broadcast %cst_81 : f32 to vector<8x64xf32>
    %280 = arith.addf %279, %278 : vector<8x64xf32>
    %281 = arith.divf %279, %280 : vector<8x64xf32>
    %282 = vector.extract_strided_slice %281 {offsets = [0, 0], sizes = [8, 32], strides = [1, 1]} : vector<8x64xf32> to vector<8x32xf32>
    %283 = vector.extract_strided_slice %281 {offsets = [0, 32], sizes = [8, 32], strides = [1, 1]} : vector<8x64xf32> to vector<8x32xf32>
    %284 = vector.extract_strided_slice %271 {offsets = [0, 64], sizes = [8, 32], strides = [1, 1]} : vector<8x96xf32> to vector<8x32xf32>
    %285 = vector.extract_strided_slice %273 {offsets = [0, 64], sizes = [8, 32], strides = [1, 1]} : vector<8x96xf32> to vector<8x32xf32>
    %286 = arith.addf %285, %269 : vector<8x32xf32>
    %287 = arith.mulf %282, %286 : vector<8x32xf32>
    %288 = arith.addf %284, %287 : vector<8x32xf32>
    %289 = math.tanh %288 : vector<8x32xf32>
    %cst_82 = arith.constant 1.000000e+00 : f32
    %290 = vector.broadcast %cst_82 : f32 to vector<8x32xf32>
    %291 = arith.subf %290, %283 : vector<8x32xf32>
    %292 = arith.mulf %291, %289 : vector<8x32xf32>
    %293 = arith.mulf %283, %270 : vector<8x32xf32>
    %294 = arith.addf %292, %293 : vector<8x32xf32>
    %295 = vector.extract_strided_slice %265 {offsets = [8, 0], sizes = [8, 96], strides = [1, 1]} : vector<64x96xf32> to vector<8x96xf32>
    %296 = arith.truncf %294 : vector<8x32xf32> to vector<8x32xbf16>
    %cst_83 = arith.constant dense<0.000000e+00> : vector<8x96xf32>
    %297 = tpu.matmul %296, %266, %cst_83 {dimension_numbers = #tpu.dot_dimension_numbers<[1], [0], [0], [1], [0, 0, 1, 1], [], []>} : vector<8x32xbf16>, vector<32x96xbf16>, vector<8x96xf32> -> vector<8x96xf32>
    %298 = vector.extract_strided_slice %295 {offsets = [0, 0], sizes = [8, 64], strides = [1, 1]} : vector<8x96xf32> to vector<8x64xf32>
    %299 = vector.extract_strided_slice %297 {offsets = [0, 0], sizes = [8, 64], strides = [1, 1]} : vector<8x96xf32> to vector<8x64xf32>
    %300 = arith.addf %298, %299 : vector<8x64xf32>
    %301 = arith.negf %300 : vector<8x64xf32>
    %302 = math.exp %301 : vector<8x64xf32>
    %cst_84 = arith.constant 1.000000e+00 : f32
    %303 = vector.broadcast %cst_84 : f32 to vector<8x64xf32>
    %304 = arith.addf %303, %302 : vector<8x64xf32>
    %305 = arith.divf %303, %304 : vector<8x64xf32>
    %306 = vector.extract_strided_slice %305 {offsets = [0, 0], sizes = [8, 32], strides = [1, 1]} : vector<8x64xf32> to vector<8x32xf32>
    %307 = vector.extract_strided_slice %305 {offsets = [0, 32], sizes = [8, 32], strides = [1, 1]} : vector<8x64xf32> to vector<8x32xf32>
    %308 = vector.extract_strided_slice %295 {offsets = [0, 64], sizes = [8, 32], strides = [1, 1]} : vector<8x96xf32> to vector<8x32xf32>
    %309 = vector.extract_strided_slice %297 {offsets = [0, 64], sizes = [8, 32], strides = [1, 1]} : vector<8x96xf32> to vector<8x32xf32>
    %310 = arith.addf %309, %269 : vector<8x32xf32>
    %311 = arith.mulf %306, %310 : vector<8x32xf32>
    %312 = arith.addf %308, %311 : vector<8x32xf32>
    %313 = math.tanh %312 : vector<8x32xf32>
    %cst_85 = arith.constant 1.000000e+00 : f32
    %314 = vector.broadcast %cst_85 : f32 to vector<8x32xf32>
    %315 = arith.subf %314, %307 : vector<8x32xf32>
    %316 = arith.mulf %315, %313 : vector<8x32xf32>
    %317 = arith.mulf %307, %294 : vector<8x32xf32>
    %318 = arith.addf %316, %317 : vector<8x32xf32>
    %319 = vector.extract_strided_slice %265 {offsets = [16, 0], sizes = [8, 96], strides = [1, 1]} : vector<64x96xf32> to vector<8x96xf32>
    %320 = arith.truncf %318 : vector<8x32xf32> to vector<8x32xbf16>
    %cst_86 = arith.constant dense<0.000000e+00> : vector<8x96xf32>
    %321 = tpu.matmul %320, %266, %cst_86 {dimension_numbers = #tpu.dot_dimension_numbers<[1], [0], [0], [1], [0, 0, 1, 1], [], []>} : vector<8x32xbf16>, vector<32x96xbf16>, vector<8x96xf32> -> vector<8x96xf32>
    %322 = vector.extract_strided_slice %319 {offsets = [0, 0], sizes = [8, 64], strides = [1, 1]} : vector<8x96xf32> to vector<8x64xf32>
    %323 = vector.extract_strided_slice %321 {offsets = [0, 0], sizes = [8, 64], strides = [1, 1]} : vector<8x96xf32> to vector<8x64xf32>
    %324 = arith.addf %322, %323 : vector<8x64xf32>
    %325 = arith.negf %324 : vector<8x64xf32>
    %326 = math.exp %325 : vector<8x64xf32>
    %cst_87 = arith.constant 1.000000e+00 : f32
    %327 = vector.broadcast %cst_87 : f32 to vector<8x64xf32>
    %328 = arith.addf %327, %326 : vector<8x64xf32>
    %329 = arith.divf %327, %328 : vector<8x64xf32>
    %330 = vector.extract_strided_slice %329 {offsets = [0, 0], sizes = [8, 32], strides = [1, 1]} : vector<8x64xf32> to vector<8x32xf32>
    %331 = vector.extract_strided_slice %329 {offsets = [0, 32], sizes = [8, 32], strides = [1, 1]} : vector<8x64xf32> to vector<8x32xf32>
    %332 = vector.extract_strided_slice %319 {offsets = [0, 64], sizes = [8, 32], strides = [1, 1]} : vector<8x96xf32> to vector<8x32xf32>
    %333 = vector.extract_strided_slice %321 {offsets = [0, 64], sizes = [8, 32], strides = [1, 1]} : vector<8x96xf32> to vector<8x32xf32>
    %334 = arith.addf %333, %269 : vector<8x32xf32>
    %335 = arith.mulf %330, %334 : vector<8x32xf32>
    %336 = arith.addf %332, %335 : vector<8x32xf32>
    %337 = math.tanh %336 : vector<8x32xf32>
    %cst_88 = arith.constant 1.000000e+00 : f32
    %338 = vector.broadcast %cst_88 : f32 to vector<8x32xf32>
    %339 = arith.subf %338, %331 : vector<8x32xf32>
    %340 = arith.mulf %339, %337 : vector<8x32xf32>
    %341 = arith.mulf %331, %318 : vector<8x32xf32>
    %342 = arith.addf %340, %341 : vector<8x32xf32>
    %343 = vector.extract_strided_slice %265 {offsets = [24, 0], sizes = [8, 96], strides = [1, 1]} : vector<64x96xf32> to vector<8x96xf32>
    %344 = arith.truncf %342 : vector<8x32xf32> to vector<8x32xbf16>
    %cst_89 = arith.constant dense<0.000000e+00> : vector<8x96xf32>
    %345 = tpu.matmul %344, %266, %cst_89 {dimension_numbers = #tpu.dot_dimension_numbers<[1], [0], [0], [1], [0, 0, 1, 1], [], []>} : vector<8x32xbf16>, vector<32x96xbf16>, vector<8x96xf32> -> vector<8x96xf32>
    %346 = vector.extract_strided_slice %343 {offsets = [0, 0], sizes = [8, 64], strides = [1, 1]} : vector<8x96xf32> to vector<8x64xf32>
    %347 = vector.extract_strided_slice %345 {offsets = [0, 0], sizes = [8, 64], strides = [1, 1]} : vector<8x96xf32> to vector<8x64xf32>
    %348 = arith.addf %346, %347 : vector<8x64xf32>
    %349 = arith.negf %348 : vector<8x64xf32>
    %350 = math.exp %349 : vector<8x64xf32>
    %cst_90 = arith.constant 1.000000e+00 : f32
    %351 = vector.broadcast %cst_90 : f32 to vector<8x64xf32>
    %352 = arith.addf %351, %350 : vector<8x64xf32>
    %353 = arith.divf %351, %352 : vector<8x64xf32>
    %354 = vector.extract_strided_slice %353 {offsets = [0, 0], sizes = [8, 32], strides = [1, 1]} : vector<8x64xf32> to vector<8x32xf32>
    %355 = vector.extract_strided_slice %353 {offsets = [0, 32], sizes = [8, 32], strides = [1, 1]} : vector<8x64xf32> to vector<8x32xf32>
    %356 = vector.extract_strided_slice %343 {offsets = [0, 64], sizes = [8, 32], strides = [1, 1]} : vector<8x96xf32> to vector<8x32xf32>
    %357 = vector.extract_strided_slice %345 {offsets = [0, 64], sizes = [8, 32], strides = [1, 1]} : vector<8x96xf32> to vector<8x32xf32>
    %358 = arith.addf %357, %269 : vector<8x32xf32>
    %359 = arith.mulf %354, %358 : vector<8x32xf32>
    %360 = arith.addf %356, %359 : vector<8x32xf32>
    %361 = math.tanh %360 : vector<8x32xf32>
    %cst_91 = arith.constant 1.000000e+00 : f32
    %362 = vector.broadcast %cst_91 : f32 to vector<8x32xf32>
    %363 = arith.subf %362, %355 : vector<8x32xf32>
    %364 = arith.mulf %363, %361 : vector<8x32xf32>
    %365 = arith.mulf %355, %342 : vector<8x32xf32>
    %366 = arith.addf %364, %365 : vector<8x32xf32>
    %367 = vector.extract_strided_slice %265 {offsets = [32, 0], sizes = [8, 96], strides = [1, 1]} : vector<64x96xf32> to vector<8x96xf32>
    %368 = arith.truncf %366 : vector<8x32xf32> to vector<8x32xbf16>
    %cst_92 = arith.constant dense<0.000000e+00> : vector<8x96xf32>
    %369 = tpu.matmul %368, %266, %cst_92 {dimension_numbers = #tpu.dot_dimension_numbers<[1], [0], [0], [1], [0, 0, 1, 1], [], []>} : vector<8x32xbf16>, vector<32x96xbf16>, vector<8x96xf32> -> vector<8x96xf32>
    %370 = vector.extract_strided_slice %367 {offsets = [0, 0], sizes = [8, 64], strides = [1, 1]} : vector<8x96xf32> to vector<8x64xf32>
    %371 = vector.extract_strided_slice %369 {offsets = [0, 0], sizes = [8, 64], strides = [1, 1]} : vector<8x96xf32> to vector<8x64xf32>
    %372 = arith.addf %370, %371 : vector<8x64xf32>
    %373 = arith.negf %372 : vector<8x64xf32>
    %374 = math.exp %373 : vector<8x64xf32>
    %cst_93 = arith.constant 1.000000e+00 : f32
    %375 = vector.broadcast %cst_93 : f32 to vector<8x64xf32>
    %376 = arith.addf %375, %374 : vector<8x64xf32>
    %377 = arith.divf %375, %376 : vector<8x64xf32>
    %378 = vector.extract_strided_slice %377 {offsets = [0, 0], sizes = [8, 32], strides = [1, 1]} : vector<8x64xf32> to vector<8x32xf32>
    %379 = vector.extract_strided_slice %377 {offsets = [0, 32], sizes = [8, 32], strides = [1, 1]} : vector<8x64xf32> to vector<8x32xf32>
    %380 = vector.extract_strided_slice %367 {offsets = [0, 64], sizes = [8, 32], strides = [1, 1]} : vector<8x96xf32> to vector<8x32xf32>
    %381 = vector.extract_strided_slice %369 {offsets = [0, 64], sizes = [8, 32], strides = [1, 1]} : vector<8x96xf32> to vector<8x32xf32>
    %382 = arith.addf %381, %269 : vector<8x32xf32>
    %383 = arith.mulf %378, %382 : vector<8x32xf32>
    %384 = arith.addf %380, %383 : vector<8x32xf32>
    %385 = math.tanh %384 : vector<8x32xf32>
    %cst_94 = arith.constant 1.000000e+00 : f32
    %386 = vector.broadcast %cst_94 : f32 to vector<8x32xf32>
    %387 = arith.subf %386, %379 : vector<8x32xf32>
    %388 = arith.mulf %387, %385 : vector<8x32xf32>
    %389 = arith.mulf %379, %366 : vector<8x32xf32>
    %390 = arith.addf %388, %389 : vector<8x32xf32>
    %391 = vector.extract_strided_slice %265 {offsets = [40, 0], sizes = [8, 96], strides = [1, 1]} : vector<64x96xf32> to vector<8x96xf32>
    %392 = arith.truncf %390 : vector<8x32xf32> to vector<8x32xbf16>
    %cst_95 = arith.constant dense<0.000000e+00> : vector<8x96xf32>
    %393 = tpu.matmul %392, %266, %cst_95 {dimension_numbers = #tpu.dot_dimension_numbers<[1], [0], [0], [1], [0, 0, 1, 1], [], []>} : vector<8x32xbf16>, vector<32x96xbf16>, vector<8x96xf32> -> vector<8x96xf32>
    %394 = vector.extract_strided_slice %391 {offsets = [0, 0], sizes = [8, 64], strides = [1, 1]} : vector<8x96xf32> to vector<8x64xf32>
    %395 = vector.extract_strided_slice %393 {offsets = [0, 0], sizes = [8, 64], strides = [1, 1]} : vector<8x96xf32> to vector<8x64xf32>
    %396 = arith.addf %394, %395 : vector<8x64xf32>
    %397 = arith.negf %396 : vector<8x64xf32>
    %398 = math.exp %397 : vector<8x64xf32>
    %cst_96 = arith.constant 1.000000e+00 : f32
    %399 = vector.broadcast %cst_96 : f32 to vector<8x64xf32>
    %400 = arith.addf %399, %398 : vector<8x64xf32>
    %401 = arith.divf %399, %400 : vector<8x64xf32>
    %402 = vector.extract_strided_slice %401 {offsets = [0, 0], sizes = [8, 32], strides = [1, 1]} : vector<8x64xf32> to vector<8x32xf32>
    %403 = vector.extract_strided_slice %401 {offsets = [0, 32], sizes = [8, 32], strides = [1, 1]} : vector<8x64xf32> to vector<8x32xf32>
    %404 = vector.extract_strided_slice %391 {offsets = [0, 64], sizes = [8, 32], strides = [1, 1]} : vector<8x96xf32> to vector<8x32xf32>
    %405 = vector.extract_strided_slice %393 {offsets = [0, 64], sizes = [8, 32], strides = [1, 1]} : vector<8x96xf32> to vector<8x32xf32>
    %406 = arith.addf %405, %269 : vector<8x32xf32>
    %407 = arith.mulf %402, %406 : vector<8x32xf32>
    %408 = arith.addf %404, %407 : vector<8x32xf32>
    %409 = math.tanh %408 : vector<8x32xf32>
    %cst_97 = arith.constant 1.000000e+00 : f32
    %410 = vector.broadcast %cst_97 : f32 to vector<8x32xf32>
    %411 = arith.subf %410, %403 : vector<8x32xf32>
    %412 = arith.mulf %411, %409 : vector<8x32xf32>
    %413 = arith.mulf %403, %390 : vector<8x32xf32>
    %414 = arith.addf %412, %413 : vector<8x32xf32>
    %415 = vector.extract_strided_slice %265 {offsets = [48, 0], sizes = [8, 96], strides = [1, 1]} : vector<64x96xf32> to vector<8x96xf32>
    %416 = arith.truncf %414 : vector<8x32xf32> to vector<8x32xbf16>
    %cst_98 = arith.constant dense<0.000000e+00> : vector<8x96xf32>
    %417 = tpu.matmul %416, %266, %cst_98 {dimension_numbers = #tpu.dot_dimension_numbers<[1], [0], [0], [1], [0, 0, 1, 1], [], []>} : vector<8x32xbf16>, vector<32x96xbf16>, vector<8x96xf32> -> vector<8x96xf32>
    %418 = vector.extract_strided_slice %415 {offsets = [0, 0], sizes = [8, 64], strides = [1, 1]} : vector<8x96xf32> to vector<8x64xf32>
    %419 = vector.extract_strided_slice %417 {offsets = [0, 0], sizes = [8, 64], strides = [1, 1]} : vector<8x96xf32> to vector<8x64xf32>
    %420 = arith.addf %418, %419 : vector<8x64xf32>
    %421 = arith.negf %420 : vector<8x64xf32>
    %422 = math.exp %421 : vector<8x64xf32>
    %cst_99 = arith.constant 1.000000e+00 : f32
    %423 = vector.broadcast %cst_99 : f32 to vector<8x64xf32>
    %424 = arith.addf %423, %422 : vector<8x64xf32>
    %425 = arith.divf %423, %424 : vector<8x64xf32>
    %426 = vector.extract_strided_slice %425 {offsets = [0, 0], sizes = [8, 32], strides = [1, 1]} : vector<8x64xf32> to vector<8x32xf32>
    %427 = vector.extract_strided_slice %425 {offsets = [0, 32], sizes = [8, 32], strides = [1, 1]} : vector<8x64xf32> to vector<8x32xf32>
    %428 = vector.extract_strided_slice %415 {offsets = [0, 64], sizes = [8, 32], strides = [1, 1]} : vector<8x96xf32> to vector<8x32xf32>
    %429 = vector.extract_strided_slice %417 {offsets = [0, 64], sizes = [8, 32], strides = [1, 1]} : vector<8x96xf32> to vector<8x32xf32>
    %430 = arith.addf %429, %269 : vector<8x32xf32>
    %431 = arith.mulf %426, %430 : vector<8x32xf32>
    %432 = arith.addf %428, %431 : vector<8x32xf32>
    %433 = math.tanh %432 : vector<8x32xf32>
    %cst_100 = arith.constant 1.000000e+00 : f32
    %434 = vector.broadcast %cst_100 : f32 to vector<8x32xf32>
    %435 = arith.subf %434, %427 : vector<8x32xf32>
    %436 = arith.mulf %435, %433 : vector<8x32xf32>
    %437 = arith.mulf %427, %414 : vector<8x32xf32>
    %438 = arith.addf %436, %437 : vector<8x32xf32>
    %439 = vector.extract_strided_slice %265 {offsets = [56, 0], sizes = [8, 96], strides = [1, 1]} : vector<64x96xf32> to vector<8x96xf32>
    %440 = arith.truncf %438 : vector<8x32xf32> to vector<8x32xbf16>
    %cst_101 = arith.constant dense<0.000000e+00> : vector<8x96xf32>
    %441 = tpu.matmul %440, %266, %cst_101 {dimension_numbers = #tpu.dot_dimension_numbers<[1], [0], [0], [1], [0, 0, 1, 1], [], []>} : vector<8x32xbf16>, vector<32x96xbf16>, vector<8x96xf32> -> vector<8x96xf32>
    %442 = vector.extract_strided_slice %439 {offsets = [0, 0], sizes = [8, 64], strides = [1, 1]} : vector<8x96xf32> to vector<8x64xf32>
    %443 = vector.extract_strided_slice %441 {offsets = [0, 0], sizes = [8, 64], strides = [1, 1]} : vector<8x96xf32> to vector<8x64xf32>
    %444 = arith.addf %442, %443 : vector<8x64xf32>
    %445 = arith.negf %444 : vector<8x64xf32>
    %446 = math.exp %445 : vector<8x64xf32>
    %cst_102 = arith.constant 1.000000e+00 : f32
    %447 = vector.broadcast %cst_102 : f32 to vector<8x64xf32>
    %448 = arith.addf %447, %446 : vector<8x64xf32>
    %449 = arith.divf %447, %448 : vector<8x64xf32>
    %450 = vector.extract_strided_slice %449 {offsets = [0, 0], sizes = [8, 32], strides = [1, 1]} : vector<8x64xf32> to vector<8x32xf32>
    %451 = vector.extract_strided_slice %449 {offsets = [0, 32], sizes = [8, 32], strides = [1, 1]} : vector<8x64xf32> to vector<8x32xf32>
    %452 = vector.extract_strided_slice %439 {offsets = [0, 64], sizes = [8, 32], strides = [1, 1]} : vector<8x96xf32> to vector<8x32xf32>
    %453 = vector.extract_strided_slice %441 {offsets = [0, 64], sizes = [8, 32], strides = [1, 1]} : vector<8x96xf32> to vector<8x32xf32>
    %454 = arith.addf %453, %269 : vector<8x32xf32>
    %455 = arith.mulf %450, %454 : vector<8x32xf32>
    %456 = arith.addf %452, %455 : vector<8x32xf32>
    %457 = math.tanh %456 : vector<8x32xf32>
    %cst_103 = arith.constant 1.000000e+00 : f32
    %458 = vector.broadcast %cst_103 : f32 to vector<8x32xf32>
    %459 = arith.subf %458, %451 : vector<8x32xf32>
    %460 = arith.mulf %459, %457 : vector<8x32xf32>
    %461 = arith.mulf %451, %438 : vector<8x32xf32>
    %462 = arith.addf %460, %461 : vector<8x32xf32>
    %cst_104 = arith.constant dense<0.000000e+00> : vector<8xf32>
    %463 = vector.multi_reduction <add>, %462, %cst_104 [1] : vector<8x32xf32> to vector<8xf32>
    %464 = vector.shape_cast %463 : vector<8xf32> to vector<8x1xf32>
    %cst_105 = arith.constant 3.200000e+01 : f32
    %465 = vector.broadcast %cst_105 : f32 to vector<8x1xf32>
    %466 = arith.divf %464, %465 : vector<8x1xf32>
    %467 = vector.broadcast %466 : vector<8x1xf32> to vector<8x32xf32>
    %468 = arith.subf %462, %467 : vector<8x32xf32>
    %469 = arith.mulf %468, %468 : vector<8x32xf32>
    %cst_106 = arith.constant dense<0.000000e+00> : vector<8xf32>
    %470 = vector.multi_reduction <add>, %469, %cst_106 [1] : vector<8x32xf32> to vector<8xf32>
    %471 = vector.shape_cast %470 : vector<8xf32> to vector<8x1xf32>
    %cst_107 = arith.constant 3.200000e+01 : f32
    %472 = vector.broadcast %cst_107 : f32 to vector<8x1xf32>
    %473 = arith.divf %471, %472 : vector<8x1xf32>
    %474 = vector.broadcast %466 : vector<8x1xf32> to vector<8x32xf32>
    %475 = arith.subf %462, %474 : vector<8x32xf32>
    %cst_108 = arith.constant 9.99999974E-6 : f32
    %476 = vector.broadcast %cst_108 : f32 to vector<8x1xf32>
    %477 = arith.addf %473, %476 : vector<8x1xf32>
    %478 = math.rsqrt %477 : vector<8x1xf32>
    %479 = vector.broadcast %478 : vector<8x1xf32> to vector<8x32xf32>
    %480 = arith.mulf %475, %479 : vector<8x32xf32>
    %c0_109 = arith.constant 0 : index
    %c0_110 = arith.constant 0 : index
    %481 = vector.load %arg11[%c0_109, %c0_110] : memref<1x32xf32, #tpu.memory_space<vmem>>, vector<1x32xf32>
    %482 = vector.broadcast %481 : vector<1x32xf32> to vector<8x32xf32>
    %483 = arith.mulf %480, %482 : vector<8x32xf32>
    %c0_111 = arith.constant 0 : index
    %c0_112 = arith.constant 0 : index
    %484 = vector.load %arg12[%c0_111, %c0_112] : memref<1x32xf32, #tpu.memory_space<vmem>>, vector<1x32xf32>
    %485 = vector.broadcast %484 : vector<1x32xf32> to vector<8x32xf32>
    %486 = arith.addf %483, %485 : vector<8x32xf32>
    %487 = arith.truncf %486 : vector<8x32xf32> to vector<8x32xbf16>
    %c0_113 = arith.constant 0 : index
    %c0_114 = arith.constant 0 : index
    %488 = vector.load %arg13[%c0_113, %c0_114] : memref<32x32xbf16, #tpu.memory_space<vmem>>, vector<32x32xbf16>
    %cst_115 = arith.constant dense<0.000000e+00> : vector<8x32xf32>
    %489 = tpu.matmul %487, %488, %cst_115 {dimension_numbers = #tpu.dot_dimension_numbers<[1], [0], [0], [1], [0, 0, 1, 1], [], []>} : vector<8x32xbf16>, vector<32x32xbf16>, vector<8x32xf32> -> vector<8x32xf32>
    %c0_116 = arith.constant 0 : index
    %c0_117 = arith.constant 0 : index
    %490 = vector.load %arg14[%c0_116, %c0_117] : memref<1x32xf32, #tpu.memory_space<vmem>>, vector<1x32xf32>
    %491 = vector.broadcast %490 : vector<1x32xf32> to vector<8x32xf32>
    %492 = arith.addf %489, %491 : vector<8x32xf32>
    %cst_118 = arith.constant 0.000000e+00 : f32
    %493 = vector.broadcast %cst_118 : f32 to vector<8x32xf32>
    %494 = arith.maximumf %492, %493 : vector<8x32xf32>
    %495 = arith.truncf %494 : vector<8x32xf32> to vector<8x32xbf16>
    %c0_119 = arith.constant 0 : index
    %c0_120 = arith.constant 0 : index
    %496 = vector.load %arg15[%c0_119, %c0_120] : memref<32x1xbf16, #tpu.memory_space<vmem>>, vector<32x1xbf16>
    %cst_121 = arith.constant dense<0.000000e+00> : vector<8x1xf32>
    %497 = tpu.matmul %495, %496, %cst_121 {dimension_numbers = #tpu.dot_dimension_numbers<[1], [0], [0], [1], [0, 0, 1, 1], [], []>} : vector<8x32xbf16>, vector<32x1xbf16>, vector<8x1xf32> -> vector<8x1xf32>
    %c0_122 = arith.constant 0 : index
    %c0_123 = arith.constant 0 : index
    %498 = vector.load %arg16[%c0_122, %c0_123] : memref<1x1xf32, #tpu.memory_space<vmem>>, vector<1x1xf32>
    %499 = vector.broadcast %498 : vector<1x1xf32> to vector<8x1xf32>
    %500 = arith.addf %497, %499 : vector<8x1xf32>
    %c0_124 = arith.constant 0 : index
    %c0_125 = arith.constant 0 : index
    %501 = vector.load %arg17[%c0_124, %c0_125] : memref<8x1xf32, #tpu.memory_space<vmem>>, vector<8x1xf32>
    tpu.vector_store %arg17[%c0_124, %c0_125], %500 {strides = array<i32>} : memref<8x1xf32, #tpu.memory_space<vmem>>, vector<8x1xf32>,
    return
  }
}

</mosaic_0001>

<bundles_post_ra>
// kernel: forward.1
= control target key start
LH: loop header
LB: loop body
LE: loop exit
PB: predicated region body
PF: predicated region fallthrough
CT: control target
= control target key end

     0   :  { %vm105_vm0 = vcmask 130048   ;;  %v2027_v31 = vmov 0   ;;  %vm228_vm5 = vcmask 523264   ;;  %s2032_s19 = smov 32   ;;  %s2657_s2 = inlined_call_operand.vmem [shape: bf16[64,192], index: 2, kind: input, shape index: {}]   ;;  %s2658_s1 = inlined_call_operand.vmem [shape: bf16[16,192], index: 1, kind: input, shape index: {}]   ;;  %s2659_s0 = inlined_call_operand.vmem [shape: bf16[64,16], index: 0, kind: input, shape index: {}]   ;;  %s2660_s4 = inlined_call_operand.vmem [shape: f32[1,64], index: 4, kind: input, shape index: {}]   ;;  %s2661_s3 = inlined_call_operand.vmem [shape: f32[1,192], index: 3, kind: input, shape index: {}]   ;;  %s2662_s5 = inlined_call_operand.vmem [shape: f32[1,64], index: 5, kind: input, shape index: {}]   ;;  %s2663_s6 = inlined_call_operand.vmem [shape: f32[1,64], index: 6, kind: input, shape index: {}]   ;;  %s2664_s10 = inlined_call_operand.vmem [shape: f32[1,32], index: 10, kind: input, shape index: {}]   ;;  %s2665_s8 = inlined_call_operand.vmem [shape: bf16[32,96], index: 8, kind: input, shape index: {}]   ;;  %s2666_s9 = inlined_call_operand.vmem [shape: f32[1,96], index: 9, kind: input, shape index: {}]   ;;  %s2667_s7 = inlined_call_operand.vmem [shape: bf16[64,96], index: 7, kind: input, shape index: {}]   ;;  %s2668_s11 = inlined_call_operand.vmem [shape: f32[1,32], index: 11, kind: input, shape index: {}]   ;;  %s2669_s12 = inlined_call_operand.vmem [shape: f32[1,32], index: 12, kind: input, shape index: {}]   ;;  %s2670_s13 = inlined_call_operand.vmem [shape: bf16[32,32], index: 13, kind: input, shape index: {}]   ;;  %s2671_s14 = inlined_call_operand.vmem [shape: f32[1,32], index: 14, kind: input, shape index: {}]   ;;  %s2672_s15 = inlined_call_operand.vmem [shape: bf16[32,1], index: 15, kind: input, shape index: {}]   ;;  %s2673_s16 = inlined_call_operand.<no memory space> [shape: f32[1,1], index: 16, kind: input, shape index: {}]   ;;  %s2674_s17 = inlined_call_operand.vmem [shape: f32[8,1], index: 17, kind: output, shape index: {}]  }
   0x1   :  { %2677 = sst [smem:[#allocation4_spill]] %s2657_s2  ;;  %v1870_v9 = vld [vmem:[%s2659_s0] sm:$0xff] }
   0x2   :  { %2678 = sst [smem:[#allocation5_spill]] %s2658_s1  ;;  %v69_v32 = vld [vmem:[%s2661_s3] sm:$0x3]  ;;  %s2028_s3 = smov 64  }
   0x3   :  { %s2679_s26 = sld [smem:[#allocation4_spill]]  ;;  %v2249_v33 = vperm.slane %v69_v32, 0  ;;  %v2255_v46 = vld [vmem:[%s2660_s4] ss:$0 sm:$0xff]  ;;  %v2257_v51 = vperm.slane %v69_v32, 1 }
   0x4   :  { %s2680_s20 = sld [smem:[#allocation5_spill]] }
   0x9   :  { %v1781_v0 = vld [vmem:[%s2679_s26 + $0x30] sm:$0xf]  ;;  %v1883_v1 = vld [vmem:[%s2679_s26 + $0x34] sm:$0xf0]  ;;  %v1773_v2 = vld [vmem:[%s2679_s26 + $0x20] sm:$0xf] }
   0xa   :  { %v2132_v3 = vor.u32 %v1883_v1, %v1781_v0  ;;  %v1881_v4 = vld [vmem:[%s2679_s26 + $0x24] sm:$0xf0]  ;;  %v1741_v5 = vld [vmem:[%s2680_s20] sm:$0xf]  ;;  %v1882_v10 = vld [vmem:[%s2679_s26 + $0x34] sm:$0xf] }
   0xb   :  { %v1875_v6 = vld [vmem:[%s2680_s20 + $0x4] sm:$0xf0]  ;;  %v2144_v8 = vor.u32 %v1881_v4, %v1773_v2  ;;  %v1765_v11 = vld [vmem:[%s2679_s26 + $0x10] sm:$0xf]  ;;  %v1879_v12 = vld [vmem:[%s2679_s26 + $0x14] sm:$0xf0] }
   0xc   :  { %v1742_v7 = vor.u32 %v1875_v6, %v1741_v5  ;;  %236 = vmatpush.bf16.msra.mxu2 %v2132_v3  ;;  %v1783_v13 = vld [vmem:[%s2679_s26 + $0x38] sm:$0xf0]  ;;  %v1880_v15 = vld [vmem:[%s2679_s26 + $0x24] sm:$0xf]  ;;  %v1775_v16 = vld [vmem:[%s2679_s26 + $0x28] sm:$0xf0]  ;;  %v2177_v19 = vor.u32 %v1879_v12, %v1765_v11 }
   0xd   :  { %v2161_v14 = vor.u32 %v1882_v10, %v1783_v13  ;;  %v1874_v17 = vld [vmem:[%s2680_s20 + $0x4] sm:$0xf]  ;;  %v1743_v18 = vld [vmem:[%s2680_s20 + $0x8] sm:$0xf0]  ;;  %v1757_v21 = vld [vmem:[%s2679_s26] sm:$0xf]  ;;  %v2187_v23 = vor.u32 %v1880_v15, %v1775_v16 }
   0xe   :  { %125 = vmatpush.bf16.msra.mxu0 %v1742_v7  ;;  %v1746_v20 = vor.u32 %v1874_v17, %v1743_v18  ;;  %v1877_v22 = vld [vmem:[%s2679_s26 + $0x4] sm:$0xf0]  ;;  %v1878_v24 = vld [vmem:[%s2679_s26 + $0x14] sm:$0xf]  ;;  %v1767_v25 = vld [vmem:[%s2679_s26 + $0x18] sm:$0xf0] }
   0xf   :  { %249 = vmatpush.bf16.msra.mxu3 %v2161_v14  ;;  %v2198_v26 = vor.u32 %v1877_v22, %v1757_v21  ;;  %v2201_v27 = vor.u32 %v1878_v24, %v1767_v25  ;;  %v1876_v28 = vld [vmem:[%s2679_s26 + $0x4] sm:$0xf]  ;;  %v1759_v29 = vld [vmem:[%s2679_s26 + $0x8] sm:$0xf0] }
  0x10   :  { %237 = vmatpush.bf16.msra.mxu2 %v2144_v8  ;;  %154 = vmatpush.bf16.msra.mxu1 %v1746_v20  ;;  %v2214_v30 = vor.u32 %v1876_v28, %v1759_v29 }
  0x11   :  { %1747 = vmatmul.msk.bf16.vlgmr.msra.gmra.mxu0 %vm105_vm0, %v1870_v9 }
  0x12   :  { %522 = vmatpush.bf16.msrb.mxu0 %v2132_v3 }
  0x13   :  { %250 = vmatpush.bf16.msra.mxu3 %v2187_v23  ;;  %1751 = vmatmul.msk.bf16.vlgmr.msra.gmra.mxu1 %vm105_vm0, %v1870_v9 }
  0x14   :  { %535 = vmatpush.bf16.msrb.mxu1 %v2161_v14  ;;  %238 = vmatpush.bf16.msra.mxu2 %v2177_v19 }
  0x16   :  { %523 = vmatpush.bf16.msrb.mxu0 %v2144_v8 }
  0x17   :  { %251 = vmatpush.bf16.msra.mxu3 %v2201_v27 }
  0x18   :  { %536 = vmatpush.bf16.msrb.mxu1 %v2187_v23  ;;  %239 = vmatpush.bf16.msra.mxu2 %v2198_v26 }
  0x1a   :  { %524 = vmatpush.bf16.msrb.mxu0 %v2177_v19 }
  0x1b   :  { %240 = vmatmul.bf16.vlgmr.msra.gmra.mxu2 %v2027_v31  ;;  %252 = vmatpush.bf16.msra.mxu3 %v2214_v30 }
  0x1c   :  { %309 = vmatpush.bf16.msrb.mxu2 %v2132_v3  ;;  %537 = vmatpush.bf16.msrb.mxu1 %v2201_v27 }
  0x1e   :  { %525 = vmatpush.bf16.msrb.mxu0 %v2198_v26  ;;  %253 = vmatmul.bf16.vlgmr.msra.gmra.mxu3 %v2027_v31 }
  0x1f   :  { %322 = vmatpush.bf16.msrb.mxu3 %v2161_v14 }
  0x20   :  { %310 = vmatpush.bf16.msrb.mxu2 %v2144_v8  ;;  %538 = vmatpush.bf16.msrb.mxu1 %v2214_v30 }
  0x22   :  { %664 = vmatpush.bf16.msra.mxu0 %v2132_v3 }
  0x23   :  { %323 = vmatpush.bf16.msrb.mxu3 %v2187_v23 }
  0x24   :  { %677 = vmatpush.bf16.msra.mxu1 %v2161_v14  ;;  %311 = vmatpush.bf16.msrb.mxu2 %v2177_v19 }
  0x26   :  { %665 = vmatpush.bf16.msra.mxu0 %v2144_v8 }
  0x27   :  { %324 = vmatpush.bf16.msrb.mxu3 %v2201_v27 }
  0x28   :  { %678 = vmatpush.bf16.msra.mxu1 %v2187_v23  ;;  %312 = vmatpush.bf16.msrb.mxu2 %v2198_v26 }
  0x2a   :  { %666 = vmatpush.bf16.msra.mxu0 %v2177_v19 }
  0x2b   :  { %325 = vmatpush.bf16.msrb.mxu3 %v2214_v30 }
  0x2c   :  { %380 = vmatpush.bf16.msra.mxu2 %v2132_v3  ;;  %679 = vmatpush.bf16.msra.mxu1 %v2201_v27 }
  0x2e   :  { %667 = vmatpush.bf16.msra.mxu0 %v2198_v26 }
  0x2f   :  { %393 = vmatpush.bf16.msra.mxu3 %v2161_v14 }
  0x30   :  { %381 = vmatpush.bf16.msra.mxu2 %v2144_v8  ;;  %680 = vmatpush.bf16.msra.mxu1 %v2214_v30 }
  0x33   :  { %394 = vmatpush.bf16.msra.mxu3 %v2187_v23 }
  0x34   :  { %382 = vmatpush.bf16.msra.mxu2 %v2177_v19 }
  0x37   :  { %395 = vmatpush.bf16.msra.mxu3 %v2201_v27 }
  0x38   :  { %383 = vmatpush.bf16.msra.mxu2 %v2198_v26 }
  0x3b   :  { %396 = vmatpush.bf16.msra.mxu3 %v2214_v30 }
  0x8e   :  { %v127_v34 = vpop.f32.mrf.mxu0 }
  0x8f   :  { %v128_v35 = vadd.f32 %v127_v34, %v2249_v33 }
  0x90   :  { %v156_v55 = vpop.f32.mrf.mxu1 }
  0x91   :  { %v157_v57 = vadd.f32 %v156_v55, %v2257_v51 }
  0x96   :  { %v129_v6 = vpop.f32.mrf.mxu0 }
  0x97   :  { %v130_v7 = vadd.f32 %v129_v6, %v2249_v33 }
  0x98   :  { %v158_v29 = vpop.f32.mrf.mxu1 }
  0x9e   :  { %v241_v36 = vpop.f32.mrf.mxu2 }
  0x9f   :  { %v258_v37 = vadd.f32 %v241_v36, %v128_v35 }
  0xa1   :  { %v1787_v38 = vmul.f32 -1.442695, %v258_v37  ;;  %v254_v39 = vpop.f32.mrf.mxu3  ;;  %v159_v37 = vadd.f32 %v158_v29, %v2257_v51 }
  0xa2   :  { %v278_v53 = vadd.f32 %v2255_v46, %v254_v39 }
  0xa3   :  { %1909 = vpow2.f32 %v1787_v38 }
  0xa6   :  { %v243_v40 = vpop.f32.mrf.mxu2 }
  0xa9   :  { %v1910_v41 = vpop.eup %1909  ;;  %v256_v43 = vpop.f32.mrf.mxu3 }
  0xaa   :  { %v262_v42 = vadd.f32 1.0, %v1910_v41  ;;  %v1871_v41 = vld [vmem:[%s2659_s0 + $0x8] sm:$0xff] }
  0xab   :  { %1748 = vmatmul.msk.bf16.gmra.mxu0 %vm105_vm0, %v1871_v41  ;;  %1752 = vmatmul.msk.bf16.gmra.mxu1 %vm105_vm0, %v1871_v41 }
  0xac   :  { %1911 = vrcp.f32 %v262_v42  ;;  %v274_v48 = vand.u32 2147483648, %v262_v42  ;;  %v272_v50 = vand.u32 2147483647, %v262_v42  ;;  %vm268_vm2 = vweird.f32 %v262_v42 }
  0xae   :  { %v275_v54 = vor.u32 1.1754944e-38, %v274_v48  ;;  %vm273_vm4 = vcmp.eq.f32.partialorder %v272_v50, 8.507059e+37 }
  0xb2   :  { %v1912_v44 = vpop.eup %1911 }
  0xb3   :  { %v264_v45 = vmul.f32 %v1912_v44, %v262_v42  ;;  %vm269_vm1 = vweird.f32 %v1912_v44 }
  0xb4   :  { %vm270_vm3 = vmor %vm268_vm2, %vm269_vm1 }
  0xb5   :  { %v265_v47 = vsub.f32 1.0, %v264_v45 }
  0xb7   :  { %v266_v49 = vmul.f32 %v1912_v44, %v265_v47 }
  0xb9   :  { %v267_v52 = vadd.f32 %v1912_v44, %v266_v49 }
  0xbb   :  { %v271_v56 = vsel %vm270_vm3, %v1912_v44, %v267_v52 }
  0xbc   :  { %v276_v58 = vsel %vm273_vm4, %v275_v54, %v271_v56 }
  0xbd   :  { %v279_v59 = vmul.f32 %v278_v53, %v276_v58  ;;  %v282_v62 = vsub.f32 1.0, %v276_v58  ;;  %v288_v0 = vmul.f32 0.0, %v276_v58 }
  0xbf   :  { %v280_v60 = vadd.f32 %v279_v59, %v157_v57 }
  0xc1   :  { %1913 = vtanh.f32 %v280_v60 }
  0xc7   :  { %v1914_v61 = vpop.eup %1913 }
  0xc8   :  { %284 = vrot.lane.b32.xlu0 %v1914_v61, %s2028_s3 }
 0x128   :  { %v132_v50 = vpop.f32.mrf.mxu0 }
 0x129   :  { %v133_v52 = vadd.f32 %v132_v50, %v2249_v33 }
 0x13a   :  { %v285_v63 = vpop.permute.xlu0 %284 }
 0x13b   :  { %v287_v1 = vmul.f32 %v285_v63, %v282_v62 }
 0x13d   :  { %v2262_v2 = vadd.f32 %v288_v0, %v287_v1 }
 0x13f   :  { %v298_v4 = vpack.c.bf16 %v2262_v2, %v2262_v2 }
 0x141   :  { %300 = vrot.lane.b32.xlu0 %v298_v4, %s2028_s3 }
 0x1b3   :  { %v301_v5 = vpop.permute.xlu0 %300 }
 0x1b4   :  { %1788 = vmatmul.msk.bf16.vlgmr.msrb.gmra.mxu2 %vm228_vm5, %v301_v5  ;;  %1789 = vmatmul.msk.bf16.vlgmr.msrb.gmra.mxu3 %vm228_vm5, %v301_v5 }
 0x1b5   :  { %451 = vmatpush.bf16.msrb.mxu2 %v2132_v3  ;;  %464 = vmatpush.bf16.msrb.mxu3 %v2161_v14 }
 0x1b9   :  { %452 = vmatpush.bf16.msrb.mxu2 %v2144_v8  ;;  %465 = vmatpush.bf16.msrb.mxu3 %v2187_v23 }
 0x1bd   :  { %453 = vmatpush.bf16.msrb.mxu2 %v2177_v19  ;;  %466 = vmatpush.bf16.msrb.mxu3 %v2201_v27 }
 0x1c1   :  { %454 = vmatpush.bf16.msrb.mxu2 %v2198_v26  ;;  %467 = vmatpush.bf16.msrb.mxu3 %v2214_v30 }
 0x237   :  { %v314_v9 = vpop.f32.mrf.mxu2  ;;  %v327_v10 = vpop.f32.mrf.mxu3 }
 0x238   :  { %v331_v11 = vadd.f32 %v314_v9, %v130_v7  ;;  %v351_v35 = vadd.f32 %v2255_v46, %v327_v10  ;;  %v161_v7 = vpop.f32.mrf.mxu1 }
 0x23a   :  { %v1790_v12 = vmul.f32 -1.442695, %v331_v11  ;;  %v162_v11 = vadd.f32 %v161_v7, %v2257_v51 }
 0x23c   :  { %1915 = vpow2.f32 %v1790_v12 }
 0x23f   :  { %v316_v13 = vpop.f32.mrf.mxu2  ;;  %v329_v15 = vpop.f32.mrf.mxu3 }
 0x242   :  { %v1916_v16 = vpop.eup %1915 }
 0x243   :  { %v335_v17 = vadd.f32 1.0, %v1916_v16 }
 0x245   :  { %1917 = vrcp.f32 %v335_v17  ;;  %v347_v22 = vand.u32 2147483648, %v335_v17  ;;  %v345_v25 = vand.u32 2147483647, %v335_v17  ;;  %vm341_vm7 = vweird.f32 %v335_v17 }
 0x247   :  { %v348_v32 = vor.u32 1.1754944e-38, %v347_v22  ;;  %vm346_vm9 = vcmp.eq.f32.partialorder %v345_v25, 8.507059e+37 }
 0x24b   :  { %v1918_v18 = vpop.eup %1917 }
 0x24c   :  { %v337_v20 = vmul.f32 %v1918_v18, %v335_v17  ;;  %vm342_vm6 = vweird.f32 %v1918_v18 }
 0x24d   :  { %vm343_vm8 = vmor %vm341_vm7, %vm342_vm6 }
 0x24e   :  { %v338_v21 = vsub.f32 1.0, %v337_v20 }
 0x250   :  { %v339_v24 = vmul.f32 %v1918_v18, %v338_v21 }
 0x252   :  { %v340_v28 = vadd.f32 %v1918_v18, %v339_v24 }
 0x254   :  { %v344_v34 = vsel %vm343_vm8, %v1918_v18, %v340_v28  ;;  %v134_v28 = vpop.f32.mrf.mxu0 }
 0x255   :  { %v349_v36 = vsel %vm346_vm9, %v348_v32, %v344_v34  ;;  %v135_v29 = vadd.f32 %v134_v28, %v2249_v33 }
 0x256   :  { %v352_v38 = vmul.f32 %v351_v35, %v349_v36  ;;  %v355_v42 = vsub.f32 1.0, %v349_v36  ;;  %v361_v44 = vmul.f32 %v349_v36, %v2262_v2 }
 0x258   :  { %v353_v39 = vadd.f32 %v352_v38, %v159_v37 }
 0x25a   :  { %1919 = vtanh.f32 %v353_v39 }
 0x260   :  { %v1920_v40 = vpop.eup %1919 }
 0x261   :  { %357 = vrot.lane.b32.xlu1 %v1920_v40, %s2028_s3  ;;  %v163_v40 = vpop.f32.mrf.mxu1 }
 0x2d3   :  { %v358_v43 = vpop.permute.xlu1 %357 }
 0x2d4   :  { %v360_v45 = vmul.f32 %v358_v43, %v355_v42 }
 0x2d6   :  { %v2287_v47 = vadd.f32 %v361_v44, %v360_v45  ;;  %v164_v45 = vadd.f32 %v163_v40, %v2257_v51 }
 0x2d8   :  { %v369_v48 = vpack.c.bf16 %v2287_v47, %v2287_v47 }
 0x2da   :  { %371 = vrot.lane.b32.xlu1 %v369_v48, %s2028_s3 }
 0x34c   :  { %v372_v49 = vpop.permute.xlu1 %371 }
 0x34d   :  { %1791 = vmatmul.msk.bf16.vlgmr.msra.gmra.mxu2 %vm228_vm5, %v372_v49  ;;  %1792 = vmatmul.msk.bf16.vlgmr.msra.gmra.mxu3 %vm228_vm5, %v372_v49 }
 0x34e   :  { %593 = vmatpush.bf16.msra.mxu2 %v2132_v3  ;;  %606 = vmatpush.bf16.msra.mxu3 %v2161_v14 }
 0x352   :  { %594 = vmatpush.bf16.msra.mxu2 %v2144_v8  ;;  %607 = vmatpush.bf16.msra.mxu3 %v2187_v23 }
 0x356   :  { %595 = vmatpush.bf16.msra.mxu2 %v2177_v19  ;;  %608 = vmatpush.bf16.msra.mxu3 %v2201_v27 }
 0x35a   :  { %596 = vmatpush.bf16.msra.mxu2 %v2198_v26  ;;  %609 = vmatpush.bf16.msra.mxu3 %v2214_v30 }
 0x3d0   :  { %v385_v53 = vpop.f32.mrf.mxu2  ;;  %v398_v54 = vpop.f32.mrf.mxu3 }
 0x3d1   :  { %v402_v55 = vadd.f32 %v385_v53, %v133_v52  ;;  %v422_v10 = vadd.f32 %v2255_v46, %v398_v54  ;;  %v1872_v52 = vld [vmem:[%s2659_s0 + $0x10] sm:$0xff]  ;;  %v1873_v53 = vld [vmem:[%s2659_s0 + $0x18] sm:$0xff] }
 0x3d2   :  { %1749 = vmatmul.msk.bf16.gmra.mxu0 %vm105_vm0, %v1872_v52  ;;  %1753 = vmatmul.msk.bf16.gmra.mxu1 %vm105_vm0, %v1872_v52 }
 0x3d3   :  { %v1793_v56 = vmul.f32 -1.442695, %v402_v55 }
 0x3d5   :  { %1921 = vpow2.f32 %v1793_v56 }
 0x3d8   :  { %v387_v57 = vpop.f32.mrf.mxu2  ;;  %v400_v58 = vpop.f32.mrf.mxu3 }
 0x3db   :  { %v1922_v59 = vpop.eup %1921 }
 0x3dc   :  { %v406_v60 = vadd.f32 1.0, %v1922_v59 }
 0x3de   :  { %1923 = vrcp.f32 %v406_v60  ;;  %v418_v0 = vand.u32 2147483648, %v406_v60  ;;  %v416_v4 = vand.u32 2147483647, %v406_v60  ;;  %vm412_vm11 = vweird.f32 %v406_v60 }
 0x3e0   :  { %v419_v6 = vor.u32 1.1754944e-38, %v418_v0  ;;  %vm417_vm13 = vcmp.eq.f32.partialorder %v416_v4, 8.507059e+37 }
 0x3e2   :  { %1750 = vmatmul.msk.bf16.gmra.mxu0 %vm105_vm0, %v1873_v53  ;;  %1754 = vmatmul.msk.bf16.gmra.mxu1 %vm105_vm0, %v1873_v53 }
 0x3e4   :  { %v1924_v61 = vpop.eup %1923 }
 0x3e5   :  { %v408_v62 = vmul.f32 %v1924_v61, %v406_v60  ;;  %vm413_vm10 = vweird.f32 %v1924_v61 }
 0x3e6   :  { %vm414_vm12 = vmor %vm412_vm11, %vm413_vm10 }
 0x3e7   :  { %v409_v63 = vsub.f32 1.0, %v408_v62 }
 0x3e9   :  { %v410_v1 = vmul.f32 %v1924_v61, %v409_v63 }
 0x3eb   :  { %v411_v5 = vadd.f32 %v1924_v61, %v410_v1 }
 0x3ed   :  { %v415_v9 = vsel %vm414_vm12, %v1924_v61, %v411_v5 }
 0x3ee   :  { %v420_v12 = vsel %vm417_vm13, %v419_v6, %v415_v9 }
 0x3ef   :  { %v423_v13 = vmul.f32 %v422_v10, %v420_v12  ;;  %v426_v17 = vsub.f32 1.0, %v420_v12  ;;  %v432_v20 = vmul.f32 %v420_v12, %v2287_v47 }
 0x3f1   :  { %v424_v15 = vadd.f32 %v423_v13, %v162_v11 }
 0x3f3   :  { %1925 = vtanh.f32 %v424_v15 }
 0x3f9   :  { %v1926_v16 = vpop.eup %1925 }
 0x3fa   :  { %428 = vrot.lane.b32.xlu2 %v1926_v16, %s2028_s3 }
 0x44f   :  { %v166_v61 = vpop.f32.mrf.mxu1  ;;  %v137_v62 = vpop.f32.mrf.mxu0 }
 0x450   :  { %v138_v7 = vadd.f32 %v137_v62, %v2249_v33 }
 0x454   :  { %v429_v18 = vpop.permute.xlu2 %428 }
 0x455   :  { %v431_v21 = vmul.f32 %v429_v18, %v426_v17 }
 0x457   :  { %v2307_v22 = vadd.f32 %v432_v20, %v431_v21  ;;  %v2344_v63 = vpop.f32.mrf.mxu1  ;;  %v139_v0 = vpop.f32.mrf.mxu0 }
 0x458   :  { %v140_v40 = vadd.f32 %v139_v0, %v2249_v33 }
 0x459   :  { %v440_v24 = vpack.c.bf16 %v2307_v22, %v2307_v22 }
 0x45b   :  { %442 = vrot.lane.b32.xlu2 %v440_v24, %s2028_s3 }
 0x45f   :  { %v2346_v1 = vpop.f32.mrf.mxu1  ;;  %v2348_v4 = vpop.f32.mrf.mxu0 }
 0x467   :  { %v2350_v5 = vpop.f32.mrf.mxu1  ;;  %v2352_v6 = vpop.f32.mrf.mxu0 }
 0x4b5   :  { %v443_v25 = vpop.permute.xlu2 %442 }
 0x4b6   :  { %1794 = vmatmul.msk.bf16.vlgmr.msrb.gmra.mxu2 %vm228_vm5, %v443_v25  ;;  %1795 = vmatmul.msk.bf16.vlgmr.msrb.gmra.mxu3 %vm228_vm5, %v443_v25 }
 0x4b7   :  { %735 = vmatpush.bf16.msrb.mxu2 %v2132_v3  ;;  %748 = vmatpush.bf16.msrb.mxu3 %v2161_v14 }
 0x4bb   :  { %736 = vmatpush.bf16.msrb.mxu2 %v2144_v8  ;;  %749 = vmatpush.bf16.msrb.mxu3 %v2187_v23 }
 0x4bf   :  { %737 = vmatpush.bf16.msrb.mxu2 %v2177_v19  ;;  %750 = vmatpush.bf16.msrb.mxu3 %v2201_v27 }
 0x4c3   :  { %738 = vmatpush.bf16.msrb.mxu2 %v2198_v26  ;;  %751 = vmatpush.bf16.msrb.mxu3 %v2214_v30 }
 0x539   :  { %v456_v32 = vpop.f32.mrf.mxu2  ;;  %v469_v34 = vpop.f32.mrf.mxu3 }
 0x53a   :  { %v473_v3 = vadd.f32 %v456_v32, %v135_v29  ;;  %v493_v43 = vadd.f32 %v2255_v46, %v469_v34 }
 0x53c   :  { %v1796_v35 = vmul.f32 -1.442695, %v473_v3 }
 0x53e   :  { %1927 = vpow2.f32 %v1796_v35 }
 0x541   :  { %v458_v14 = vpop.f32.mrf.mxu2  ;;  %v471_v8 = vpop.f32.mrf.mxu3 }
 0x542   :  { %v167_v14 = vadd.f32 %v166_v61, %v2257_v51 }
 0x544   :  { %v1928_v36 = vpop.eup %1927 }
 0x545   :  { %v477_v23 = vadd.f32 1.0, %v1928_v36 }
 0x547   :  { %1929 = vrcp.f32 %v477_v23  ;;  %v489_v38 = vand.u32 2147483648, %v477_v23  ;;  %v487_v30 = vand.u32 2147483647, %v477_v23  ;;  %vm483_vm15 = vweird.f32 %v477_v23 }
 0x549   :  { %v490_v41 = vor.u32 1.1754944e-38, %v489_v38  ;;  %vm488_vm2 = vcmp.eq.f32.partialorder %v487_v30, 8.507059e+37 }
 0x54d   :  { %v1930_v19 = vpop.eup %1929 }
 0x54e   :  { %v479_v37 = vmul.f32 %v1930_v19, %v477_v23  ;;  %vm484_vm14 = vweird.f32 %v1930_v19 }
 0x54f   :  { %vm485_vm1 = vmor %vm483_vm15, %vm484_vm14  ;;  %vm294_vm15 = vcmask 261120  }
 0x550   :  { %v480_v27 = vsub.f32 1.0, %v479_v37 }
 0x552   :  { %v481_v26 = vmul.f32 %v1930_v19, %v480_v27 }
 0x554   :  { %v482_v39 = vadd.f32 %v1930_v19, %v481_v26 }
 0x556   :  { %v486_v42 = vsel %vm485_vm1, %v1930_v19, %v482_v39  ;;  %vm296_vm1 = vcmask 523520  }
 0x557   :  { %v491_v44 = vsel %vm488_vm2, %v490_v41, %v486_v42 }
 0x558   :  { %v494_v48 = vmul.f32 %v493_v43, %v491_v44  ;;  %v497_v54 = vsub.f32 1.0, %v491_v44  ;;  %v503_v56 = vmul.f32 %v491_v44, %v2307_v22 }
 0x55a   :  { %v495_v49 = vadd.f32 %v494_v48, %v164_v45 }
 0x55c   :  { %1931 = vtanh.f32 %v495_v49 }
 0x562   :  { %v1932_v50 = vpop.eup %1931 }
 0x563   :  { %499 = vrot.lane.b32.xlu0 %v1932_v50, %s2028_s3 }
 0x5d5   :  { %v500_v55 = vpop.permute.xlu0 %499 }
 0x5d6   :  { %v502_v57 = vmul.f32 %v500_v55, %v497_v54 }
 0x5d8   :  { %v2337_v58 = vadd.f32 %v503_v56, %v502_v57 }
 0x5da   :  { %v511_v59 = vpack.c.bf16 %v2337_v58, %v2337_v58 }
 0x5dc   :  { %513 = vrot.lane.b32.xlu1 %v511_v59, %s2028_s3 }
 0x64e   :  { %v514_v60 = vpop.permute.xlu1 %513 }
 0x64f   :  { %1797 = vmatmul.msk.bf16.vlgmr.msrb.gmra.mxu0 %vm228_vm5, %v514_v60  ;;  %1798 = vmatmul.msk.bf16.vlgmr.msrb.gmra.mxu1 %vm228_vm5, %v514_v60 }
 0x6cc   :  { %v527_v9 = vpop.f32.mrf.mxu0  ;;  %v540_v10 = vpop.f32.mrf.mxu1 }
 0x6cd   :  { %v544_v11 = vadd.f32 %v527_v9, %v138_v7  ;;  %v564_v3 = vadd.f32 %v2255_v46, %v540_v10  ;;  %v169_v7 = vadd.f32 %v2344_v63, %v2257_v51  ;;  %v143_v63 = vadd.f32 %v2348_v4, %v2249_v33 }
 0x6cf   :  { %v1799_v12 = vmul.f32 -1.442695, %v544_v11 }
 0x6d1   :  { %1933 = vpow2.f32 %v1799_v12 }
 0x6d4   :  { %v529_v13 = vpop.f32.mrf.mxu0  ;;  %v542_v15 = vpop.f32.mrf.mxu1 }
 0x6d7   :  { %v1934_v16 = vpop.eup %1933 }
 0x6d8   :  { %v548_v17 = vadd.f32 1.0, %v1934_v16 }
 0x6da   :  { %1935 = vrcp.f32 %v548_v17  ;;  %v560_v24 = vand.u32 2147483648, %v548_v17  ;;  %v558_v28 = vand.u32 2147483647, %v548_v17  ;;  %vm554_vm3 = vweird.f32 %v548_v17 }
 0x6dc   :  { %v561_v32 = vor.u32 1.1754944e-38, %v560_v24  ;;  %vm559_vm6 = vcmp.eq.f32.partialorder %v558_v28, 8.507059e+37 }
 0x6e0   :  { %v1936_v18 = vpop.eup %1935 }
 0x6e1   :  { %v550_v20 = vmul.f32 %v1936_v18, %v548_v17  ;;  %vm555_vm0 = vweird.f32 %v1936_v18 }
 0x6e2   :  { %vm556_vm4 = vmor %vm554_vm3, %vm555_vm0 }
 0x6e3   :  { %v551_v21 = vsub.f32 1.0, %v550_v20 }
 0x6e5   :  { %v552_v25 = vmul.f32 %v1936_v18, %v551_v21 }
 0x6e7   :  { %v553_v29 = vadd.f32 %v1936_v18, %v552_v25 }
 0x6e9   :  { %v557_v34 = vsel %vm556_vm4, %v1936_v18, %v553_v29 }
 0x6ea   :  { %v562_v35 = vsel %vm559_vm6, %v561_v32, %v557_v34 }
 0x6eb   :  { %v565_v8 = vmul.f32 %v564_v3, %v562_v35  ;;  %v568_v19 = vsub.f32 1.0, %v562_v35  ;;  %v574_v27 = vmul.f32 %v562_v35, %v2337_v58 }
 0x6ed   :  { %v566_v36 = vadd.f32 %v565_v8, %v167_v14 }
 0x6ef   :  { %1937 = vtanh.f32 %v566_v36 }
 0x6f5   :  { %v1938_v23 = vpop.eup %1937 }
 0x6f6   :  { %570 = vrot.lane.b32.xlu2 %v1938_v23, %s2028_s3 }
 0x750   :  { %v571_v37 = vpop.permute.xlu2 %570 }
 0x751   :  { %v573_v38 = vmul.f32 %v571_v37, %v568_v19 }
 0x753   :  { %v2359_v26 = vadd.f32 %v574_v27, %v573_v38 }
 0x755   :  { %v582_v30 = vpack.c.bf16 %v2359_v26, %v2359_v26 }
 0x757   :  { %584 = vrot.lane.b32.xlu0 %v582_v30, %s2028_s3 }
 0x7c9   :  { %v585_v39 = vpop.permute.xlu0 %584 }
 0x7ca   :  { %1800 = vmatmul.msk.bf16.vlgmr.msra.gmra.mxu2 %vm228_vm5, %v585_v39  ;;  %1801 = vmatmul.msk.bf16.vlgmr.msra.gmra.mxu3 %vm228_vm5, %v585_v39  ;;  %v172_v39 = vadd.f32 %v2346_v1, %v2257_v51 }
 0x84d   :  { %v598_v41 = vpop.f32.mrf.mxu2  ;;  %v611_v42 = vpop.f32.mrf.mxu3 }
 0x84e   :  { %v615_v43 = vadd.f32 %v598_v41, %v140_v40  ;;  %v635_v62 = vadd.f32 %v2255_v46, %v611_v42 }
 0x850   :  { %v1802_v44 = vmul.f32 -1.442695, %v615_v43 }
 0x852   :  { %1939 = vpow2.f32 %v1802_v44 }
 0x855   :  { %v600_v45 = vpop.f32.mrf.mxu2  ;;  %v613_v48 = vpop.f32.mrf.mxu3 }
 0x858   :  { %v1940_v49 = vpop.eup %1939 }
 0x859   :  { %v619_v50 = vadd.f32 1.0, %v1940_v49 }
 0x85b   :  { %1941 = vrcp.f32 %v619_v50  ;;  %v631_v55 = vand.u32 2147483648, %v619_v50  ;;  %v629_v57 = vand.u32 2147483647, %v619_v50  ;;  %vm625_vm8 = vweird.f32 %v619_v50 }
 0x85d   :  { %v632_v60 = vor.u32 1.1754944e-38, %v631_v55  ;;  %vm630_vm10 = vcmp.eq.f32.partialorder %v629_v57, 8.507059e+37 }
 0x861   :  { %v1942_v52 = vpop.eup %1941 }
 0x862   :  { %v621_v53 = vmul.f32 %v1942_v52, %v619_v50  ;;  %vm626_vm7 = vweird.f32 %v1942_v52 }
 0x863   :  { %vm627_vm9 = vmor %vm625_vm8, %vm626_vm7 }
 0x864   :  { %v622_v54 = vsub.f32 1.0, %v621_v53  ;;  %v145_v53 = vadd.f32 %v2352_v6, %v2249_v33 }
 0x866   :  { %v623_v56 = vmul.f32 %v1942_v52, %v622_v54 }
 0x868   :  { %v624_v59 = vadd.f32 %v1942_v52, %v623_v56 }
 0x86a   :  { %v628_v61 = vsel %vm627_vm9, %v1942_v52, %v624_v59 }
 0x86b   :  { %v633_v0 = vsel %vm630_vm10, %v632_v60, %v628_v61 }
 0x86c   :  { %v636_v9 = vmul.f32 %v635_v62, %v633_v0  ;;  %v639_v12 = vsub.f32 1.0, %v633_v0  ;;  %v645_v15 = vmul.f32 %v633_v0, %v2359_v26 }
 0x86e   :  { %v637_v10 = vadd.f32 %v636_v9, %v169_v7 }
 0x870   :  { %1943 = vtanh.f32 %v637_v10 }
 0x876   :  { %v1944_v11 = vpop.eup %1943 }
 0x877   :  { %641 = vrot.lane.b32.xlu1 %v1944_v11, %s2028_s3 }
 0x8e9   :  { %v642_v13 = vpop.permute.xlu1 %641 }
 0x8ea   :  { %v644_v16 = vmul.f32 %v642_v13, %v639_v12 }
 0x8ec   :  { %v2372_v17 = vadd.f32 %v645_v15, %v644_v16  ;;  %v174_v16 = vadd.f32 %v2350_v5, %v2257_v51 }
 0x8ee   :  { %v653_v18 = vpack.c.bf16 %v2372_v17, %v2372_v17 }
 0x8f0   :  { %655 = vrot.lane.b32.xlu2 %v653_v18, %s2028_s3 }
 0x94a   :  { %v656_v20 = vpop.permute.xlu2 %655 }
 0x94b   :  { %1803 = vmatmul.msk.bf16.vlgmr.msra.gmra.mxu0 %vm228_vm5, %v656_v20  ;;  %1804 = vmatmul.msk.bf16.vlgmr.msra.gmra.mxu1 %vm228_vm5, %v656_v20 }
 0x9c8   :  { %v669_v21 = vpop.f32.mrf.mxu0  ;;  %v682_v24 = vpop.f32.mrf.mxu1 }
 0x9c9   :  { %v686_v25 = vadd.f32 %v669_v21, %v143_v63  ;;  %v706_v38 = vadd.f32 %v2255_v46, %v682_v24 }
 0x9cb   :  { %v1805_v28 = vmul.f32 -1.442695, %v686_v25 }
 0x9cd   :  { %1945 = vpow2.f32 %v1805_v28 }
 0x9d0   :  { %v671_v29 = vpop.f32.mrf.mxu0  ;;  %v684_v32 = vpop.f32.mrf.mxu1 }
 0x9d1   :  { %v2029_v32 = vmov 64.0  }
 0x9d3   :  { %v1946_v34 = vpop.eup %1945 }
 0x9d4   :  { %v690_v3 = vadd.f32 1.0, %v1946_v34 }
 0x9d6   :  { %1947 = vrcp.f32 %v690_v3  ;;  %v702_v36 = vand.u32 2147483648, %v690_v3  ;;  %v700_v19 = vand.u32 2147483647, %v690_v3  ;;  %vm696_vm12 = vweird.f32 %v690_v3 }
 0x9d8   :  { %v703_v4 = vor.u32 1.1754944e-38, %v702_v36  ;;  %vm701_vm14 = vcmp.eq.f32.partialorder %v700_v19, 8.507059e+37 }
 0x9dc   :  { %v1948_v35 = vpop.eup %1947 }
 0x9dd   :  { %v692_v14 = vmul.f32 %v1948_v35, %v690_v3  ;;  %vm697_vm11 = vweird.f32 %v1948_v35 }
 0x9de   :  { %vm698_vm13 = vmor %vm696_vm12, %vm697_vm11 }
 0x9df   :  { %v693_v8 = vsub.f32 1.0, %v692_v14 }
 0x9e1   :  { %v694_v23 = vmul.f32 %v1948_v35, %v693_v8 }
 0x9e3   :  { %v695_v37 = vadd.f32 %v1948_v35, %v694_v23 }
 0x9e5   :  { %v699_v27 = vsel %vm698_vm13, %v1948_v35, %v695_v37 }
 0x9e6   :  { %v704_v30 = vsel %vm701_vm14, %v703_v4, %v699_v27 }
 0x9e7   :  { %v707_v40 = vmul.f32 %v706_v38, %v704_v30  ;;  %v710_v43 = vsub.f32 1.0, %v704_v30  ;;  %v716_v45 = vmul.f32 %v704_v30, %v2372_v17 }
 0x9e9   :  { %v708_v41 = vadd.f32 %v707_v40, %v172_v39 }
 0x9eb   :  { %1949 = vtanh.f32 %v708_v41 }
 0x9f1   :  { %v1950_v42 = vpop.eup %1949 }
 0x9f2   :  { %712 = vrot.lane.b32.xlu0 %v1950_v42, %s2028_s3 }
 0x9fa   :  { %291 = vrot.lane.b32.xlu0 %v2262_v2, %s2028_s3 }
 0xa64   :  { %v713_v44 = vpop.permute.xlu0 %712 }
 0xa65   :  { %v715_v48 = vmul.f32 %v713_v44, %v710_v43 }
 0xa67   :  { %v717_v49 = vadd.f32 %v716_v45, %v715_v48  ;;  %v2428_v45 = vld [vmem:[%s2665_s8 + $0x8] sm:$0xff]  ;;  %v1903_v48 = vld [vmem:[%s2664_s10] ss:$0 sm:$0xff] }
 0xa68   :  { %1118 = vmatpush.bf16.msrb.mxu1 %v2428_v45  ;;  %1181 = vmatpush.bf16.msra.mxu2 %v2428_v45 }
 0xa69   :  { %v724_v50 = vpack.c.bf16 %v717_v49, %v717_v49  ;;  %1241 = vmatpush.bf16.msra.mxu3 %v2428_v45 }
 0xa6b   :  { %726 = vrot.lane.b32.xlu1 %v724_v50, %s2028_s3 }
 0xa6c   :  { %v292_v1 = vpop.permute.xlu0 %291 }
 0xa6d   :  { %295 = vst.msk [vmem:[#allocation2] sm:$0xff] %vm294_vm15, %v292_v1 }
 0xa6e   :  { %297 = vst.msk [vmem:[#allocation2 + $0x38] sm:$0xff] %vm296_vm1, %v292_v1 }
 0xa73   :  { %364 = vrot.lane.b32.xlu1 %v2287_v47, %s2028_s3 }
 0xadd   :  { %v727_v2 = vpop.permute.xlu1 %726 }
 0xade   :  { %1806 = vmatmul.msk.bf16.vlgmr.msrb.gmra.mxu2 %vm228_vm5, %v727_v2  ;;  %1807 = vmatmul.msk.bf16.vlgmr.msrb.gmra.mxu3 %vm228_vm5, %v727_v2  ;;  %v1887_v2 = vld [vmem:[%s2667_s7 + $0x18] sm:$0xff] }
 0xadf   :  { %1066 = vmatpush.bf16.msrb.mxu0 %v1887_v2 }
 0xae5   :  { %v365_v52 = vpop.permute.xlu1 %364 }
 0xae6   :  { %367 = vst.msk [vmem:[#allocation2 + $0x8] sm:$0xff] %vm294_vm15, %v365_v52 }
 0xae7   :  { %368 = vst.msk [vmem:[#allocation2 + $0x30] sm:$0xff] %vm296_vm1, %v365_v52  ;;  %v1886_v52 = vld [vmem:[%s2667_s7 + $0x10] sm:$0xff] }
 0xae8   :  { %1067 = vmatpush.bf16.msrb.mxu0 %v1886_v52 }
 0xb61   :  { %v740_v54 = vpop.f32.mrf.mxu2  ;;  %v753_v55 = vpop.f32.mrf.mxu3 }
 0xb62   :  { %v757_v56 = vadd.f32 %v740_v54, %v145_v53  ;;  %v777_v13 = vadd.f32 %v2255_v46, %v753_v55  ;;  %v1885_v53 = vld [vmem:[%s2667_s7 + $0x8] sm:$0xff]  ;;  %v1884_v55 = vld [vmem:[%s2667_s7] sm:$0xff] }
 0xb63   :  { %1068 = vmatpush.bf16.msrb.mxu0 %v1885_v53 }
 0xb64   :  { %v1808_v57 = vmul.f32 -1.442695, %v757_v56 }
 0xb66   :  { %1951 = vpow2.f32 %v1808_v57 }
 0xb67   :  { %1069 = vmatpush.bf16.msrb.mxu0 %v1884_v55 }
 0xb69   :  { %v742_v59 = vpop.f32.mrf.mxu2  ;;  %v755_v47 = vpop.f32.mrf.mxu3 }
 0xb6c   :  { %v1952_v60 = vpop.eup %1951 }
 0xb6d   :  { %v761_v61 = vadd.f32 1.0, %v1952_v60 }
 0xb6f   :  { %1953 = vrcp.f32 %v761_v61  ;;  %v773_v9 = vand.u32 2147483648, %v761_v61  ;;  %v771_v11 = vand.u32 2147483647, %v761_v61  ;;  %vm767_vm0 = vweird.f32 %v761_v61 }
 0xb71   :  { %v774_v33 = vor.u32 1.1754944e-38, %v773_v9  ;;  %vm772_vm4 = vcmp.eq.f32.partialorder %v771_v11, 8.507059e+37 }
 0xb75   :  { %v1954_v62 = vpop.eup %1953 }
 0xb76   :  { %v763_v0 = vmul.f32 %v1954_v62, %v761_v61  ;;  %vm768_vm2 = vweird.f32 %v1954_v62 }
 0xb77   :  { %vm769_vm3 = vmor %vm767_vm0, %vm768_vm2 }
 0xb78   :  { %v764_v7 = vsub.f32 1.0, %v763_v0 }
 0xb7a   :  { %v765_v10 = vmul.f32 %v1954_v62, %v764_v7 }
 0xb7c   :  { %v766_v12 = vadd.f32 %v1954_v62, %v765_v10 }
 0xb7e   :  { %v770_v6 = vsel %vm769_vm3, %v1954_v62, %v766_v12 }
 0xb7f   :  { %v775_v15 = vsel %vm772_vm4, %v774_v33, %v770_v6 }
 0xb80   :  { %v778_v18 = vmul.f32 %v777_v13, %v775_v15  ;;  %v781_v21 = vsub.f32 1.0, %v775_v15  ;;  %v787_v25 = vmul.f32 %v775_v15, %v717_v49  ;;  %v2473_v15 = vld [vmem:[%s2662_s5] ss:$0 sm:$0xff] }
 0xb82   :  { %v779_v20 = vadd.f32 %v778_v18, %v174_v16 }
 0xb84   :  { %1955 = vtanh.f32 %v779_v20 }
 0xb85   :  { %1957 = vrcp.f32 %v2029_v32  ;;  %v2492_v32 = vld [vmem:[%s2666_s9] ss:$0 sm:$0xff] }
 0xb8a   :  { %v1956_v63 = vpop.eup %1955 }
 0xb8b   :  { %783 = vrot.lane.b32.xlu2 %v1956_v63, %s2028_s3  ;;  %v1958_v34 = vpop.eup %1957 }
 0xb8c   :  { %v828_v3 = vmul.f32 64.0, %v1958_v34  ;;  %vm832_vm6 = vweird.f32 %v1958_v34 }
 0xb8e   :  { %v829_v14 = vsub.f32 1.0, %v828_v3 }
 0xb90   :  { %v830_v8 = vmul.f32 %v1958_v34, %v829_v14 }
 0xb92   :  { %v831_v23 = vadd.f32 %v1958_v34, %v830_v8 }
 0xb93   :  { %719 = vrot.lane.b32.xlu2 %v717_v49, %s2028_s3  ;;  %v2437_v49 = vld [vmem:[%s2665_s8] sm:$0xff] }
 0xb94   :  { %v2411_v37 = vsel %vm832_vm6, %v1958_v34, %v831_v23  ;;  %1119 = vmatpush.bf16.msrb.mxu1 %v2437_v49  ;;  %1182 = vmatpush.bf16.msra.mxu2 %v2437_v49 }
 0xb95   :  { %1242 = vmatpush.bf16.msra.mxu3 %v2437_v49 }
 0xb97   :  { %1120 = vmatmul.bf16.vlgmr.msrb.gmra.mxu1 %v2027_v31 }
 0xb98   :  { %1301 = vmatpush.bf16.msra.mxu1 %v2428_v45  ;;  %1361 = vmatpush.bf16.msrb.mxu2 %v2428_v45 }
 0xb99   :  { %1421 = vmatpush.bf16.msrb.mxu3 %v2428_v45 }
 0xb9c   :  { %1302 = vmatpush.bf16.msra.mxu1 %v2437_v49  ;;  %1362 = vmatpush.bf16.msrb.mxu2 %v2437_v49 }
 0xb9d   :  { %1422 = vmatpush.bf16.msrb.mxu3 %v2437_v49 }
 0xba0   :  { %1481 = vmatpush.bf16.msrb.mxu1 %v2428_v45 }
 0xba4   :  { %1482 = vmatpush.bf16.msrb.mxu1 %v2437_v49 }
 0xbe5   :  { %v784_v24 = vpop.permute.xlu2 %783 }
 0xbe6   :  { %v786_v28 = vmul.f32 %v784_v24, %v781_v21  ;;  %v2481_v21 = vld [vmem:[%s2663_s6] ss:$0 sm:$0xff]  ;;  %s2030_s6 = smov 96  }
 0xbe8   :  { %v788_v29 = vadd.f32 %v787_v25, %v786_v28 }
 0xbea   :  { %790 = vrot.lane.b32.xlu0 %v788_v29, %s2028_s3 }
 0xbed   :  { %v720_v46 = vpop.permute.xlu2 %719 }
 0xbee   :  { %722 = vst.msk [vmem:[#allocation2 + $0x30] sm:$0xff] %vm294_vm15, %v720_v46 }
 0xbef   :  { %723 = vst.msk [vmem:[#allocation2 + $0x8] sm:$0xff] %vm296_vm1, %v720_v46 }
 0xbf6   :  { %v796_v51 = vld [vmem:[#allocation2 + $0x8] sm:$0xff] }
 0xbf7   :  { %v806_v5 = vsel %vm228_vm5, %v796_v51, 0.0 }
 0xbf8   :  { %807 = vadd.xlane.f32.xlu2 %v806_v5 }
 0xc14   :  { %v1121_v13 = vpop.f32.mrf.mxu1 }
 0xc1c   :  { %v1123_v29 = vpop.f32.mrf.mxu1 }
 0xc5c   :  { %v791_v35 = vpop.permute.xlu0 %790 }
 0xc5d   :  { %793 = vst.msk [vmem:[#allocation2 + $0x38] sm:$0xff] %vm294_vm15, %v791_v35 }
 0xc5e   :  { %794 = vst.msk [vmem:[#allocation2] sm:$0xff] %vm296_vm1, %v791_v35 }
 0xc65   :  { %v795_v36 = vld [vmem:[#allocation2] sm:$0xff] }
 0xc66   :  { %v803_v19 = vsel %vm228_vm5, %v795_v36, 0.0 }
 0xc67   :  { %804 = vadd.xlane.f32.xlu1 %v803_v19 }
 0xc6b   :  { %v808_v4 = vpop.xlane.xlu2 %807 }
 0xc6c   :  { %v835_v27 = vmul.f32 %v2411_v37, %v808_v4 }
 0xc6e   :  { %v2414_v38 = vsub.f32 %v796_v51, %v835_v27 }
 0xc70   :  { %v851_v30 = vmul.f32 %v2414_v38, %v2414_v38 }
 0xc72   :  { %v861_v39 = vsel %vm228_vm5, %v851_v30, 0.0 }
 0xc73   :  { %862 = vadd.xlane.f32.xlu2 %v861_v39 }
 0xc80   :  { %1145 = vrot.lane.b32.xlu1 %v1903_v48, %s2028_s3 }
 0xcda   :  { %v805_v40 = vpop.xlane.xlu1 %804 }
 0xcdb   :  { %v834_v41 = vmul.f32 %v2411_v37, %v805_v40 }
 0xcdd   :  { %v2420_v42 = vsub.f32 %v795_v36, %v834_v41 }
 0xcdf   :  { %v850_v43 = vmul.f32 %v2420_v42, %v2420_v42 }
 0xce1   :  { %v858_v44 = vsel %vm228_vm5, %v850_v43, 0.0 }
 0xce2   :  { %859 = vadd.xlane.f32.xlu0 %v858_v44 }
 0xce6   :  { %v863_v50 = vpop.xlane.xlu2 %862 }
 0xce7   :  { %v883_v1 = vmul.f32 %v863_v50, %v2411_v37 }
 0xce9   :  { %v891_v31 = vadd.f32 1e-05, %v883_v1 }
 0xceb   :  { %1959 = vrsqrt.f32 %v891_v31  ;;  %vm914_vm8 = vweird.f32 %v891_v31 }
 0xcf1   :  { %v1960_v54 = vpop.eup %1959 }
 0xcf2   :  { %v909_v56 = vmul.f32 %v1960_v54, %v891_v31  ;;  %vm915_vm7 = vweird.f32 %v1960_v54  ;;  %v2468_v33 = vpop.permute.xlu1 %1145 }
 0xcf3   :  { %vm916_vm9 = vmor %vm914_vm8, %vm915_vm7  ;;  %v1148_v18 = vadd.f32 %v2468_v33, %v1121_v13 }
 0xcf4   :  { %v910_v57 = vmul.f32 %v1960_v54, %v909_v56 }
 0xcf5   :  { %1150 = vrot.lane.b32.xlu2 %v1148_v18, %s2028_s3 }
 0xcf6   :  { %v911_v61 = vmul.f32 0.5, %v910_v57 }
 0xcf8   :  { %v912_v62 = vsub.f32 1.5, %v911_v61 }
 0xcfa   :  { %v913_v7 = vmul.f32 %v1960_v54, %v912_v62 }
 0xcfc   :  { %v917_v11 = vsel %vm916_vm9, %v1960_v54, %v913_v7 }
 0xcfd   :  { %v979_v16 = vmul.f32 %v917_v11, %v2414_v38 }
 0xcff   :  { %v991_v24 = vmul.f32 %v2473_v15, %v979_v16 }
 0xd01   :  { %v1003_v46 = vadd.f32 %v2481_v21, %v991_v24 }
 0xd4f   :  { %v1151_v41 = vpop.permute.xlu2 %1150 }
 0xd55   :  { %v860_v59 = vpop.xlane.xlu0 %859 }
 0xd56   :  { %v882_v47 = vmul.f32 %v860_v59, %v2411_v37 }
 0xd58   :  { %v890_v60 = vadd.f32 1e-05, %v882_v47 }
 0xd5a   :  { %1961 = vrsqrt.f32 %v890_v60  ;;  %vm904_vm11 = vweird.f32 %v890_v60 }
 0xd60   :  { %v1962_v0 = vpop.eup %1961 }
 0xd61   :  { %v899_v9 = vmul.f32 %v1962_v0, %v890_v60  ;;  %vm905_vm10 = vweird.f32 %v1962_v0 }
 0xd62   :  { %vm906_vm12 = vmor %vm904_vm11, %vm905_vm10 }
 0xd63   :  { %v900_v10 = vmul.f32 %v1962_v0, %v899_v9 }
 0xd65   :  { %v901_v12 = vmul.f32 0.5, %v900_v10 }
 0xd67   :  { %v902_v6 = vsub.f32 1.5, %v901_v12 }
 0xd69   :  { %v903_v20 = vmul.f32 %v1962_v0, %v902_v6 }
 0xd6b   :  { %v907_v63 = vsel %vm906_vm12, %v1962_v0, %v903_v20 }
 0xd6c   :  { %v978_v25 = vmul.f32 %v907_v63, %v2420_v42 }
 0xd6e   :  { %v990_v28 = vmul.f32 %v2473_v15, %v978_v25 }
 0xd70   :  { %v1002_v51 = vadd.f32 %v2481_v21, %v990_v28 }
 0xd72   :  { %v1010_v5 = vpack.c.bf16 %v1003_v46, %v1002_v51 }
 0xd74   :  { %1825 = vmatmul.msk.bf16.vlgmr.msrb.gmra.mxu0 %vm228_vm5, %v1010_v5 }
 0xdf1   :  { %v1071_v34 = vpop.f32.mrf.mxu0 }
 0xdf2   :  { %v1072_v3 = vadd.f32 %v2492_v32, %v1071_v34 }
 0xdf4   :  { %v1125_v35 = vadd.f32 %v1121_v13, %v1072_v3 }
 0xdf6   :  { %v1837_v14 = vmul.f32 -1.442695, %v1125_v35 }
 0xdf8   :  { %1963 = vpow2.f32 %v1837_v14 }
 0xdf9   :  { %v1073_v60 = vpop.f32.mrf.mxu0 }
 0xdfa   :  { %v1074_v61 = vadd.f32 %v2492_v32, %v1073_v60 }
 0xdfe   :  { %v1964_v8 = vpop.eup %1963 }
 0xdff   :  { %v1129_v36 = vadd.f32 1.0, %v1964_v8 }
 0xe01   :  { %1965 = vrcp.f32 %v1129_v36  ;;  %v1141_v27 = vand.u32 2147483648, %v1129_v36  ;;  %v1139_v30 = vand.u32 2147483647, %v1129_v36  ;;  %vm1135_vm14 = vweird.f32 %v1129_v36 }
 0xe03   :  { %v1142_v40 = vor.u32 1.1754944e-38, %v1141_v27  ;;  %vm1140_vm0 = vcmp.eq.f32.partialorder %v1139_v30, 8.507059e+37 }
 0xe07   :  { %v1966_v23 = vpop.eup %1965 }
 0xe08   :  { %v1131_v19 = vmul.f32 %v1966_v23, %v1129_v36  ;;  %vm1136_vm13 = vweird.f32 %v1966_v23 }
 0xe09   :  { %vm1137_vm2 = vmor %vm1135_vm14, %vm1136_vm13 }
 0xe0a   :  { %v1132_v4 = vsub.f32 1.0, %v1131_v19 }
 0xe0c   :  { %v1133_v38 = vmul.f32 %v1966_v23, %v1132_v4 }
 0xe0e   :  { %v1134_v39 = vadd.f32 %v1966_v23, %v1133_v38 }
 0xe10   :  { %v1138_v42 = vsel %vm1137_vm2, %v1966_v23, %v1134_v39 }
 0xe11   :  { %v1143_v43 = vsel %vm1140_vm0, %v1142_v40, %v1138_v42 }
 0xe12   :  { %v1153_v44 = vmul.f32 %v1151_v41, %v1143_v43  ;;  %v1160_v2 = vsub.f32 1.0, %v1143_v43  ;;  %v1166_v52 = vmul.f32 0.0, %v1143_v43 }
 0xe14   :  { %1155 = vrot.lane.b32.xlu0 %v1153_v44, %s2028_s3 }
 0xe86   :  { %v1156_v48 = vpop.permute.xlu0 %1155 }
 0xe87   :  { %v1158_v50 = vadd.f32 %v1156_v48, %v1072_v3 }
 0xe89   :  { %1967 = vtanh.f32 %v1158_v50 }
 0xe8f   :  { %v1968_v1 = vpop.eup %1967 }
 0xe90   :  { %1162 = vrot.lane.b32.xlu1 %v1968_v1, %s2030_s6 }
 0xe98   :  { %435 = vrot.lane.b32.xlu1 %v2307_v22, %s2028_s3 }
 0xea0   :  { %648 = vrot.lane.b32.xlu1 %v2372_v17, %s2028_s3 }
 0xf02   :  { %v1163_v31 = vpop.permute.xlu1 %1162 }
 0xf03   :  { %v1165_v53 = vmul.f32 %v1163_v31, %v1160_v2 }
 0xf05   :  { %v2501_v54 = vadd.f32 %v1166_v52, %v1165_v53 }
 0xf07   :  { %v1168_v55 = vpack.c.bf16 %v2501_v54, %v2501_v54 }
 0xf09   :  { %1170 = vrot.lane.b32.xlu0 %v1168_v55, %s2030_s6 }
 0xf0a   :  { %v436_v56 = vpop.permute.xlu1 %435 }
 0xf0b   :  { %438 = vst.msk [vmem:[#allocation2 + $0x10] sm:$0xff] %vm294_vm15, %v436_v56 }
 0xf0c   :  { %439 = vst.msk [vmem:[#allocation2 + $0x28] sm:$0xff] %vm296_vm1, %v436_v56 }
 0xf11   :  { %506 = vrot.lane.b32.xlu0 %v2337_v58, %s2028_s3 }
 0xf12   :  { %v649_v22 = vpop.permute.xlu1 %648 }
 0xf13   :  { %651 = vst.msk [vmem:[#allocation2 + $0x28] sm:$0xff] %vm294_vm15, %v649_v22 }
 0xf14   :  { %652 = vst.msk [vmem:[#allocation2 + $0x10] sm:$0xff] %vm296_vm1, %v649_v22 }
 0xf7b   :  { %v1171_v17 = vpop.permute.xlu0 %1170 }
 0xf7c   :  { %1838 = vmatmul.msk.bf16.vlgmr.msra.gmra.mxu2 %vm294_vm15, %v1171_v17 }
 0xf7d   :  { %1541 = vmatpush.bf16.msra.mxu2 %v2428_v45 }
 0xf81   :  { %1542 = vmatpush.bf16.msra.mxu2 %v2437_v49  ;;  %v797_v49 = vld [vmem:[#allocation2 + $0x10] sm:$0xff] }
 0xf82   :  { %v809_v0 = vsel %vm228_vm5, %v797_v49, 0.0 }
 0xf83   :  { %v507_v57 = vpop.permute.xlu0 %506 }
 0xf84   :  { %509 = vst.msk [vmem:[#allocation2 + $0x18] sm:$0xff] %vm294_vm15, %v507_v57 }
 0xf85   :  { %510 = vst.msk [vmem:[#allocation2 + $0x20] sm:$0xff] %vm296_vm1, %v507_v57 }
 0xfff   :  { %v1184_v59 = vpop.f32.mrf.mxu2 }
0x1000   :  { %v1208_v58 = vadd.f32 %v1184_v59, %v2468_v33  ;;  %v1188_v45 = vadd.f32 %v1184_v59, %v1074_v61 }
0x1002   :  { %1210 = vrot.lane.b32.xlu2 %v1208_v58, %s2028_s3  ;;  %v1839_v62 = vmul.f32 -1.442695, %v1188_v45 }
0x1004   :  { %1969 = vpow2.f32 %v1839_v62 }
0x1007   :  { %v1186_v47 = vpop.f32.mrf.mxu2 }
0x100a   :  { %577 = vrot.lane.b32.xlu2 %v2359_v26, %s2028_s3  ;;  %v1970_v7 = vpop.eup %1969 }
0x100b   :  { %v1192_v9 = vadd.f32 1.0, %v1970_v7 }
0x100d   :  { %1971 = vrcp.f32 %v1192_v9  ;;  %v1204_v26 = vand.u32 2147483648, %v1192_v9  ;;  %vm1198_vm4 = vweird.f32 %v1192_v9  ;;  %v1202_v16 = vand.u32 2147483647, %v1192_v9 }
0x100f   :  { %v1205_v20 = vor.u32 1.1754944e-38, %v1204_v26  ;;  %vm1203_vm7 = vcmp.eq.f32.partialorder %v1202_v16, 8.507059e+37 }
0x1013   :  { %v1972_v10 = vpop.eup %1971 }
0x1014   :  { %v1194_v11 = vmul.f32 %v1972_v10, %v1192_v9  ;;  %vm1199_vm3 = vweird.f32 %v1972_v10 }
0x1015   :  { %vm1200_vm6 = vmor %vm1198_vm4, %vm1199_vm3 }
0x1016   :  { %v1195_v12 = vsub.f32 1.0, %v1194_v11 }
0x1018   :  { %v1196_v6 = vmul.f32 %v1972_v10, %v1195_v12 }
0x101a   :  { %v1197_v13 = vadd.f32 %v1972_v10, %v1196_v6 }
0x101c   :  { %v1201_v18 = vsel %vm1200_vm6, %v1972_v10, %v1197_v13 }
0x101d   :  { %v1206_v24 = vsel %vm1203_vm7, %v1205_v20, %v1201_v18 }
0x101e   :  { %v1220_v30 = vsub.f32 1.0, %v1206_v24  ;;  %v1226_v40 = vmul.f32 %v1206_v24, %v2501_v54 }
0x1033   :  { %810 = vadd.xlane.f32.xlu2 %v809_v0 }
0x105c   :  { %v1211_v63 = vpop.permute.xlu2 %1210 }
0x105d   :  { %v1213_v25 = vmul.f32 %v1211_v63, %v1206_v24 }
0x105f   :  { %1215 = vrot.lane.b32.xlu0 %v1213_v25, %s2028_s3 }
0x1064   :  { %v578_v28 = vpop.permute.xlu2 %577 }
0x1065   :  { %580 = vst.msk [vmem:[#allocation2 + $0x20] sm:$0xff] %vm294_vm15, %v578_v28 }
0x1066   :  { %581 = vst.msk [vmem:[#allocation2 + $0x18] sm:$0xff] %vm296_vm1, %v578_v28 }
0x106d   :  { %v798_v29 = vld [vmem:[#allocation2 + $0x18] sm:$0xff] }
0x106e   :  { %v812_v46 = vsel %vm228_vm5, %v798_v29, 0.0 }
0x106f   :  { %813 = vadd.xlane.f32.xlu1 %v812_v46 }
0x10a6   :  { %v811_v23 = vpop.xlane.xlu2 %810 }
0x10a7   :  { %v836_v19 = vmul.f32 %v2411_v37, %v811_v23 }
0x10a9   :  { %v844_v4 = vsub.f32 %v797_v49, %v836_v19 }
0x10ab   :  { %v852_v27 = vmul.f32 %v844_v4, %v844_v4 }
0x10ad   :  { %v864_v38 = vsel %vm228_vm5, %v852_v27, 0.0 }
0x10d1   :  { %v1216_v51 = vpop.permute.xlu0 %1215 }
0x10d2   :  { %v1218_v5 = vadd.f32 %v1216_v51, %v1074_v61 }
0x10d4   :  { %1973 = vtanh.f32 %v1218_v5 }
0x10da   :  { %v1974_v34 = vpop.eup %1973 }
0x10db   :  { %1222 = vrot.lane.b32.xlu0 %v1974_v34, %s2030_s6 }
0x10e2   :  { %v814_v3 = vpop.xlane.xlu1 %813 }
0x10e3   :  { %v837_v35 = vmul.f32 %v2411_v37, %v814_v3 }
0x10e5   :  { %v845_v14 = vsub.f32 %v798_v29, %v837_v35 }
0x10e7   :  { %v853_v8 = vmul.f32 %v845_v14, %v845_v14 }
0x10e9   :  { %v867_v36 = vsel %vm228_vm5, %v853_v8, 0.0 }
0x10ea   :  { %868 = vadd.xlane.f32.xlu2 %v867_v36 }
0x1105   :  { %865 = vadd.xlane.f32.xlu0 %v864_v38 }
0x114d   :  { %v1223_v39 = vpop.permute.xlu0 %1222 }
0x114e   :  { %v1225_v41 = vmul.f32 %v1223_v39, %v1220_v30 }
0x1150   :  { %v2533_v42 = vadd.f32 %v1226_v40, %v1225_v41 }
0x1152   :  { %v1228_v43 = vpack.c.bf16 %v2533_v42, %v2533_v42 }
0x1154   :  { %1230 = vrot.lane.b32.xlu1 %v1228_v43, %s2030_s6 }
0x115d   :  { %v869_v44 = vpop.xlane.xlu2 %868 }
0x115e   :  { %v885_v48 = vmul.f32 %v869_v44, %v2411_v37  ;;  %v799_v44 = vld [vmem:[#allocation2 + $0x20] sm:$0xff] }
0x1160   :  { %v893_v50 = vadd.f32 1e-05, %v885_v48  ;;  %v815_v48 = vsel %vm228_vm5, %v799_v44, 0.0 }
0x1162   :  { %1975 = vrsqrt.f32 %v893_v50  ;;  %vm934_vm8 = vweird.f32 %v893_v50 }
0x1168   :  { %v1976_v1 = vpop.eup %1975 }
0x1169   :  { %v929_v2 = vmul.f32 %v1976_v1, %v893_v50  ;;  %vm935_vm1 = vweird.f32 %v1976_v1 }
0x116a   :  { %vm936_vm9 = vmor %vm934_vm8, %vm935_vm1 }
0x116b   :  { %v930_v31 = vmul.f32 %v1976_v1, %v929_v2 }
0x116d   :  { %v931_v55 = vmul.f32 0.5, %v930_v31 }
0x116f   :  { %v932_v56 = vsub.f32 1.5, %v931_v55 }
0x1171   :  { %v933_v17 = vmul.f32 %v1976_v1, %v932_v56 }
0x1173   :  { %v937_v58 = vsel %vm936_vm9, %v1976_v1, %v933_v17 }
0x1174   :  { %v981_v61 = vmul.f32 %v937_v58, %v845_v14 }
0x1176   :  { %v993_v0 = vmul.f32 %v2473_v15, %v981_v61 }
0x1178   :  { %v866_v52 = vpop.xlane.xlu0 %865  ;;  %v1005_v10 = vadd.f32 %v2481_v21, %v993_v0 }
0x1179   :  { %v884_v53 = vmul.f32 %v866_v52, %v2411_v37  ;;  %v800_v52 = vld [vmem:[#allocation2 + $0x28] sm:$0xff] }
0x117b   :  { %v892_v54 = vadd.f32 1e-05, %v884_v53 }
0x117d   :  { %1977 = vrsqrt.f32 %v892_v54  ;;  %vm924_vm11 = vweird.f32 %v892_v54 }
0x1183   :  { %v1978_v22 = vpop.eup %1977 }
0x1184   :  { %v919_v57 = vmul.f32 %v1978_v22, %v892_v54  ;;  %vm925_vm10 = vweird.f32 %v1978_v22 }
0x1185   :  { %vm926_vm12 = vmor %vm924_vm11, %vm925_vm10 }
0x1186   :  { %v920_v59 = vmul.f32 %v1978_v22, %v919_v57 }
0x1188   :  { %v921_v47 = vmul.f32 0.5, %v920_v59 }
0x118a   :  { %v922_v60 = vsub.f32 1.5, %v921_v47 }
0x118c   :  { %v923_v45 = vmul.f32 %v1978_v22, %v922_v60 }
0x118e   :  { %v927_v62 = vsel %vm926_vm12, %v1978_v22, %v923_v45 }
0x118f   :  { %v980_v49 = vmul.f32 %v927_v62, %v844_v4 }
0x1191   :  { %v992_v7 = vmul.f32 %v2473_v15, %v980_v49 }
0x1193   :  { %v1004_v9 = vadd.f32 %v2481_v21, %v992_v7 }
0x1195   :  { %v1011_v11 = vpack.c.bf16 %v1005_v10, %v1004_v9 }
0x1197   :  { %1826 = vmatmul.msk.bf16.gmra.mxu0 %vm228_vm5, %v1011_v11 }
0x11c6   :  { %v1231_v12 = vpop.permute.xlu1 %1230 }
0x11c7   :  { %1840 = vmatmul.msk.bf16.vlgmr.msra.gmra.mxu3 %vm294_vm15, %v1231_v12 }
0x1214   :  { %v1076_v16 = vpop.f32.mrf.mxu0 }
0x1215   :  { %v1077_v18 = vadd.f32 %v2492_v32, %v1076_v16 }
0x121c   :  { %v1078_v53 = vpop.f32.mrf.mxu0 }
0x121d   :  { %v1079_v54 = vadd.f32 %v2492_v32, %v1078_v53 }
0x124a   :  { %v1244_v6 = vpop.f32.mrf.mxu3 }
0x124b   :  { %v1268_v13 = vadd.f32 %v1244_v6, %v2468_v33  ;;  %v1248_v20 = vadd.f32 %v1244_v6, %v1077_v18 }
0x124d   :  { %1270 = vrot.lane.b32.xlu2 %v1268_v13, %s2028_s3  ;;  %v1841_v63 = vmul.f32 -1.442695, %v1248_v20 }
0x124f   :  { %1979 = vpow2.f32 %v1841_v63 }
0x1252   :  { %v1246_v26 = vpop.f32.mrf.mxu3 }
0x1255   :  { %v1980_v24 = vpop.eup %1979 }
0x1256   :  { %v1252_v25 = vadd.f32 1.0, %v1980_v24 }
0x1258   :  { %1981 = vrcp.f32 %v1252_v25  ;;  %v1264_v34 = vand.u32 2147483648, %v1252_v25  ;;  %vm1258_vm14 = vweird.f32 %v1252_v25  ;;  %v1262_v3 = vand.u32 2147483647, %v1252_v25 }
0x125a   :  { %v1265_v14 = vor.u32 1.1754944e-38, %v1264_v34  ;;  %vm1263_vm0 = vcmp.eq.f32.partialorder %v1262_v3, 8.507059e+37 }
0x125e   :  { %v1982_v28 = vpop.eup %1981 }
0x125f   :  { %v1254_v29 = vmul.f32 %v1982_v28, %v1252_v25  ;;  %vm1259_vm13 = vweird.f32 %v1982_v28 }
0x1260   :  { %vm1260_vm2 = vmor %vm1258_vm14, %vm1259_vm13 }
0x1261   :  { %v1255_v46 = vsub.f32 1.0, %v1254_v29 }
0x1263   :  { %v1256_v51 = vmul.f32 %v1982_v28, %v1255_v46 }
0x1265   :  { %v1257_v5 = vadd.f32 %v1982_v28, %v1256_v51 }
0x1267   :  { %v1261_v35 = vsel %vm1260_vm2, %v1982_v28, %v1257_v5 }
0x1268   :  { %v1266_v36 = vsel %vm1263_vm0, %v1265_v14, %v1261_v35 }
0x1269   :  { %v1280_v38 = vsub.f32 1.0, %v1266_v36  ;;  %v1286_v39 = vmul.f32 %v1266_v36, %v2533_v42  ;;  %v818_v42 = vsel %vm228_vm5, %v800_v52, 0.0 }
0x12a7   :  { %v1271_v8 = vpop.permute.xlu2 %1270 }
0x12a8   :  { %v1273_v23 = vmul.f32 %v1271_v8, %v1266_v36 }
0x12aa   :  { %1275 = vrot.lane.b32.xlu0 %v1273_v23, %s2028_s3 }
0x131c   :  { %v1276_v19 = vpop.permute.xlu0 %1275 }
0x131d   :  { %v1278_v4 = vadd.f32 %v1276_v19, %v1077_v18 }
0x131f   :  { %1983 = vtanh.f32 %v1278_v4 }
0x1325   :  { %v1984_v27 = vpop.eup %1983 }
0x1326   :  { %1282 = vrot.lane.b32.xlu1 %v1984_v27, %s2030_s6 }
0x1398   :  { %v1283_v30 = vpop.permute.xlu1 %1282 }
0x1399   :  { %v1285_v40 = vmul.f32 %v1283_v30, %v1280_v38 }
0x139b   :  { %v1287_v41 = vadd.f32 %v1286_v39, %v1285_v40 }
0x139d   :  { %v1288_v43 = vpack.c.bf16 %v1287_v41, %v1287_v41 }
0x139f   :  { %1290 = vrot.lane.b32.xlu2 %v1288_v43, %s2030_s6 }
0x13c8   :  { %816 = vadd.xlane.f32.xlu2 %v815_v48 }
0x13f9   :  { %v1291_v50 = vpop.permute.xlu2 %1290 }
0x13fa   :  { %1842 = vmatmul.msk.bf16.vlgmr.msra.gmra.mxu1 %vm294_vm15, %v1291_v50 }
0x143b   :  { %v817_v20 = vpop.xlane.xlu2 %816 }
0x143c   :  { %v838_v63 = vmul.f32 %v2411_v37, %v817_v20 }
0x143e   :  { %v846_v24 = vsub.f32 %v799_v44, %v838_v63 }
0x1440   :  { %v854_v25 = vmul.f32 %v846_v24, %v846_v24 }
0x1442   :  { %v870_v28 = vsel %vm228_vm5, %v854_v25, 0.0 }
0x1477   :  { %v1304_v1 = vpop.f32.mrf.mxu1 }
0x1478   :  { %v1328_v2 = vadd.f32 %v1304_v1, %v2468_v33  ;;  %v1308_v55 = vadd.f32 %v1304_v1, %v1079_v54 }
0x147a   :  { %1330 = vrot.lane.b32.xlu0 %v1328_v2, %s2028_s3  ;;  %v1843_v56 = vmul.f32 -1.442695, %v1308_v55 }
0x147c   :  { %1985 = vpow2.f32 %v1843_v56 }
0x147f   :  { %v1306_v31 = vpop.f32.mrf.mxu1 }
0x1482   :  { %v1986_v22 = vpop.eup %1985 }
0x1483   :  { %v1312_v17 = vadd.f32 1.0, %v1986_v22 }
0x1485   :  { %1987 = vrcp.f32 %v1312_v17  ;;  %v1324_v61 = vand.u32 2147483648, %v1312_v17  ;;  %vm1318_vm4 = vweird.f32 %v1312_v17  ;;  %v1322_v45 = vand.u32 2147483647, %v1312_v17 }
0x1487   :  { %v1325_v49 = vor.u32 1.1754944e-38, %v1324_v61  ;;  %vm1323_vm7 = vcmp.eq.f32.partialorder %v1322_v45, 8.507059e+37 }
0x148b   :  { %v1988_v57 = vpop.eup %1987 }
0x148c   :  { %v1314_v59 = vmul.f32 %v1988_v57, %v1312_v17  ;;  %vm1319_vm3 = vweird.f32 %v1988_v57 }
0x148d   :  { %vm1320_vm6 = vmor %vm1318_vm4, %vm1319_vm3 }
0x148e   :  { %v1315_v58 = vsub.f32 1.0, %v1314_v59 }
0x1490   :  { %v1316_v47 = vmul.f32 %v1988_v57, %v1315_v58 }
0x1492   :  { %v1317_v60 = vadd.f32 %v1988_v57, %v1316_v47 }
0x1494   :  { %v1321_v62 = vsel %vm1320_vm6, %v1988_v57, %v1317_v60 }
0x1495   :  { %v1326_v7 = vsel %vm1323_vm7, %v1325_v49, %v1321_v62 }
0x1496   :  { %v1340_v29 = vsub.f32 1.0, %v1326_v7  ;;  %v1346_v51 = vmul.f32 %v1326_v7, %v1287_v41 }
0x14a4   :  { %819 = vadd.xlane.f32.xlu0 %v818_v42 }
0x14ec   :  { %v1331_v0 = vpop.permute.xlu0 %1330 }
0x14ed   :  { %v1333_v9 = vmul.f32 %v1331_v0, %v1326_v7 }
0x14ef   :  { %1335 = vrot.lane.b32.xlu1 %v1333_v9, %s2028_s3 }
0x1517   :  { %v820_v10 = vpop.xlane.xlu0 %819 }
0x1518   :  { %v839_v11 = vmul.f32 %v2411_v37, %v820_v10 }
0x151a   :  { %v847_v12 = vsub.f32 %v800_v52, %v839_v11 }
0x151c   :  { %v855_v6 = vmul.f32 %v847_v12, %v847_v12 }
0x151e   :  { %v873_v13 = vsel %vm228_vm5, %v855_v6, 0.0 }
0x151f   :  { %874 = vadd.xlane.f32.xlu2 %v873_v13 }
0x1561   :  { %v1336_v26 = vpop.permute.xlu1 %1335 }
0x1562   :  { %v1338_v16 = vadd.f32 %v1336_v26, %v1079_v54 }
0x1564   :  { %1989 = vtanh.f32 %v1338_v16 }
0x156a   :  { %v1990_v18 = vpop.eup %1989 }
0x156b   :  { %1342 = vrot.lane.b32.xlu1 %v1990_v18, %s2030_s6 }
0x1592   :  { %v875_v35 = vpop.xlane.xlu2 %874 }
0x1593   :  { %v887_v14 = vmul.f32 %v875_v35, %v2411_v37  ;;  %v801_v35 = vld [vmem:[#allocation2 + $0x30] sm:$0xff] }
0x1595   :  { %871 = vadd.xlane.f32.xlu1 %v870_v28  ;;  %v895_v8 = vadd.f32 1e-05, %v887_v14  ;;  %v821_v14 = vsel %vm228_vm5, %v801_v35, 0.0 }
0x1597   :  { %1991 = vrsqrt.f32 %v895_v8  ;;  %vm954_vm8 = vweird.f32 %v895_v8 }
0x159d   :  { %v1992_v36 = vpop.eup %1991 }
0x159e   :  { %v949_v23 = vmul.f32 %v1992_v36, %v895_v8  ;;  %vm955_vm1 = vweird.f32 %v1992_v36 }
0x159f   :  { %vm956_vm9 = vmor %vm954_vm8, %vm955_vm1 }
0x15a0   :  { %v950_v19 = vmul.f32 %v1992_v36, %v949_v23 }
0x15a2   :  { %v951_v30 = vmul.f32 0.5, %v950_v19 }
0x15a4   :  { %v952_v39 = vsub.f32 1.5, %v951_v30 }
0x15a6   :  { %v953_v41 = vmul.f32 %v1992_v36, %v952_v39 }
0x15a8   :  { %v957_v48 = vsel %vm956_vm9, %v1992_v36, %v953_v41 }
0x15a9   :  { %v983_v2 = vmul.f32 %v957_v48, %v847_v12 }
0x15ab   :  { %v995_v53 = vmul.f32 %v2473_v15, %v983_v2 }
0x15ad   :  { %v1007_v56 = vadd.f32 %v2481_v21, %v995_v53 }
0x15dd   :  { %v1343_v46 = vpop.permute.xlu1 %1342 }
0x15de   :  { %v1345_v5 = vmul.f32 %v1343_v46, %v1340_v29 }
0x15e0   :  { %v2565_v34 = vadd.f32 %v1346_v51, %v1345_v5 }
0x15e2   :  { %v1348_v3 = vpack.c.bf16 %v2565_v34, %v2565_v34 }
0x15e4   :  { %1350 = vrot.lane.b32.xlu0 %v1348_v3, %s2030_s6 }
0x1608   :  { %v872_v4 = vpop.xlane.xlu1 %871 }
0x1609   :  { %v886_v27 = vmul.f32 %v872_v4, %v2411_v37 }
0x160b   :  { %v894_v38 = vadd.f32 1e-05, %v886_v27 }
0x160d   :  { %1993 = vrsqrt.f32 %v894_v38  ;;  %vm944_vm11 = vweird.f32 %v894_v38 }
0x1613   :  { %v1994_v40 = vpop.eup %1993 }
0x1614   :  { %v939_v43 = vmul.f32 %v1994_v40, %v894_v38  ;;  %vm945_vm10 = vweird.f32 %v1994_v40 }
0x1615   :  { %vm946_vm12 = vmor %vm944_vm11, %vm945_vm10 }
0x1616   :  { %v940_v44 = vmul.f32 %v1994_v40, %v939_v43 }
0x1618   :  { %v941_v50 = vmul.f32 0.5, %v940_v44 }
0x161a   :  { %v942_v1 = vsub.f32 1.5, %v941_v50 }
0x161c   :  { %v943_v31 = vmul.f32 %v1994_v40, %v942_v1 }
0x161e   :  { %v947_v52 = vsel %vm946_vm12, %v1994_v40, %v943_v31 }
0x161f   :  { %v982_v42 = vmul.f32 %v947_v52, %v846_v24 }
0x1621   :  { %v994_v54 = vmul.f32 %v2473_v15, %v982_v42 }
0x1623   :  { %v1006_v55 = vadd.f32 %v2481_v21, %v994_v54 }
0x1625   :  { %v1012_v22 = vpack.c.bf16 %v1007_v56, %v1006_v55 }
0x1627   :  { %1827 = vmatmul.msk.bf16.gmra.mxu0 %vm228_vm5, %v1012_v22 }
0x1656   :  { %v1351_v17 = vpop.permute.xlu0 %1350 }
0x1657   :  { %1844 = vmatmul.msk.bf16.vlgmr.msrb.gmra.mxu2 %vm294_vm15, %v1351_v17 }
0x16a4   :  { %v1081_v47 = vpop.f32.mrf.mxu0 }
0x16a5   :  { %v1082_v60 = vadd.f32 %v2492_v32, %v1081_v47 }
0x16ac   :  { %v1083_v4 = vpop.f32.mrf.mxu0 }
0x16ad   :  { %v1084_v27 = vadd.f32 %v2492_v32, %v1083_v4 }
0x16da   :  { %v1364_v57 = vpop.f32.mrf.mxu2 }
0x16db   :  { %v1388_v59 = vadd.f32 %v1364_v57, %v2468_v33  ;;  %v1368_v61 = vadd.f32 %v1364_v57, %v1082_v60 }
0x16dd   :  { %1390 = vrot.lane.b32.xlu2 %v1388_v59, %s2028_s3  ;;  %v1845_v45 = vmul.f32 -1.442695, %v1368_v61 }
0x16df   :  { %1995 = vpow2.f32 %v1845_v45 }
0x16e2   :  { %v1366_v58 = vpop.f32.mrf.mxu2 }
0x16e5   :  { %v1996_v62 = vpop.eup %1995 }
0x16e6   :  { %v1372_v49 = vadd.f32 1.0, %v1996_v62 }
0x16e8   :  { %1997 = vrcp.f32 %v1372_v49  ;;  %v1384_v12 = vand.u32 2147483648, %v1372_v49  ;;  %vm1378_vm14 = vweird.f32 %v1372_v49  ;;  %v1382_v6 = vand.u32 2147483647, %v1372_v49 }
0x16ea   :  { %v1385_v26 = vor.u32 1.1754944e-38, %v1384_v12  ;;  %vm1383_vm0 = vcmp.eq.f32.partialorder %v1382_v6, 8.507059e+37 }
0x16ee   :  { %v1998_v0 = vpop.eup %1997 }
0x16ef   :  { %v1374_v7 = vmul.f32 %v1998_v0, %v1372_v49  ;;  %vm1379_vm13 = vweird.f32 %v1998_v0 }
0x16f0   :  { %vm1380_vm2 = vmor %vm1378_vm14, %vm1379_vm13 }
0x16f1   :  { %v1375_v9 = vsub.f32 1.0, %v1374_v7 }
0x16f3   :  { %v1376_v10 = vmul.f32 %v1998_v0, %v1375_v9 }
0x16f5   :  { %v1377_v11 = vadd.f32 %v1998_v0, %v1376_v10 }
0x16f7   :  { %v1381_v13 = vsel %vm1380_vm2, %v1998_v0, %v1377_v11 }
0x16f8   :  { %v1386_v18 = vsel %vm1383_vm0, %v1385_v26, %v1381_v13 }
0x16f9   :  { %v1400_v28 = vsub.f32 1.0, %v1386_v18  ;;  %v1406_v46 = vmul.f32 %v1386_v18, %v2565_v34  ;;  %v802_v34 = vld [vmem:[#allocation2 + $0x38] sm:$0xff] }
0x16fa   :  { %v824_v38 = vsel %vm228_vm5, %v802_v34, 0.0 }
0x1737   :  { %v1391_v16 = vpop.permute.xlu2 %1390 }
0x1738   :  { %v1393_v20 = vmul.f32 %v1391_v16, %v1386_v18 }
0x173a   :  { %1395 = vrot.lane.b32.xlu1 %v1393_v20, %s2028_s3 }
0x17ac   :  { %v1396_v63 = vpop.permute.xlu1 %1395 }
0x17ad   :  { %v1398_v24 = vadd.f32 %v1396_v63, %v1082_v60 }
0x17af   :  { %1999 = vtanh.f32 %v1398_v24 }
0x17b5   :  { %v2000_v25 = vpop.eup %1999 }
0x17b6   :  { %1402 = vrot.lane.b32.xlu0 %v2000_v25, %s2030_s6 }
0x1828   :  { %v1403_v29 = vpop.permute.xlu0 %1402 }
0x1829   :  { %v1405_v51 = vmul.f32 %v1403_v29, %v1400_v28 }
0x182b   :  { %v1407_v5 = vadd.f32 %v1406_v46, %v1405_v51 }
0x182d   :  { %v1408_v3 = vpack.c.bf16 %v1407_v5, %v1407_v5 }
0x182f   :  { %1410 = vrot.lane.b32.xlu0 %v1408_v3, %s2030_s6 }
0x1859   :  { %822 = vadd.xlane.f32.xlu0 %v821_v14 }
0x18a1   :  { %v1411_v8 = vpop.permute.xlu0 %1410 }
0x18a2   :  { %1846 = vmatmul.msk.bf16.vlgmr.msrb.gmra.mxu3 %vm294_vm15, %v1411_v8 }
0x18cc   :  { %v823_v61 = vpop.xlane.xlu0 %822 }
0x18cd   :  { %v840_v45 = vmul.f32 %v2411_v37, %v823_v61 }
0x18cf   :  { %v848_v62 = vsub.f32 %v801_v35, %v840_v45 }
0x18d1   :  { %v856_v49 = vmul.f32 %v848_v62, %v848_v62 }
0x18d3   :  { %v876_v0 = vsel %vm228_vm5, %v856_v49, 0.0 }
0x1925   :  { %v1424_v36 = vpop.f32.mrf.mxu3 }
0x1926   :  { %v1448_v23 = vadd.f32 %v1424_v36, %v2468_v33  ;;  %v1428_v30 = vadd.f32 %v1424_v36, %v1084_v27 }
0x1928   :  { %1450 = vrot.lane.b32.xlu2 %v1448_v23, %s2028_s3  ;;  %v1847_v39 = vmul.f32 -1.442695, %v1428_v30 }
0x192a   :  { %2001 = vpow2.f32 %v1847_v39 }
0x192d   :  { %v1426_v19 = vpop.f32.mrf.mxu3 }
0x1930   :  { %v2002_v40 = vpop.eup %2001 }
0x1931   :  { %v1432_v41 = vadd.f32 1.0, %v2002_v40 }
0x1933   :  { %2003 = vrcp.f32 %v1432_v41  ;;  %v1444_v2 = vand.u32 2147483648, %v1432_v41  ;;  %vm1438_vm4 = vweird.f32 %v1432_v41  ;;  %v1442_v31 = vand.u32 2147483647, %v1432_v41 }
0x1935   :  { %v1445_v42 = vor.u32 1.1754944e-38, %v1444_v2  ;;  %vm1443_vm7 = vcmp.eq.f32.partialorder %v1442_v31, 8.507059e+37 }
0x1939   :  { %v2004_v43 = vpop.eup %2003 }
0x193a   :  { %v1434_v44 = vmul.f32 %v2004_v43, %v1432_v41  ;;  %vm1439_vm3 = vweird.f32 %v2004_v43 }
0x193b   :  { %vm1440_vm6 = vmor %vm1438_vm4, %vm1439_vm3 }
0x193c   :  { %v1435_v48 = vsub.f32 1.0, %v1434_v44 }
0x193e   :  { %v1436_v50 = vmul.f32 %v2004_v43, %v1435_v48 }
0x1940   :  { %v1437_v1 = vadd.f32 %v2004_v43, %v1436_v50 }
0x1942   :  { %v1441_v52 = vsel %vm1440_vm6, %v2004_v43, %v1437_v1 }
0x1943   :  { %v1446_v54 = vsel %vm1443_vm7, %v1445_v42, %v1441_v52 }
0x1944   :  { %v1460_v7 = vsub.f32 1.0, %v1446_v54  ;;  %v1466_v10 = vmul.f32 %v1446_v54, %v1407_v5 }
0x1951   :  { %825 = vadd.xlane.f32.xlu2 %v824_v38 }
0x1982   :  { %v1451_v53 = vpop.permute.xlu2 %1450 }
0x1983   :  { %v1453_v55 = vmul.f32 %v1451_v53, %v1446_v54 }
0x1985   :  { %1455 = vrot.lane.b32.xlu1 %v1453_v55, %s2028_s3 }
0x19c4   :  { %v826_v56 = vpop.xlane.xlu2 %825 }
0x19c5   :  { %v841_v22 = vmul.f32 %v2411_v37, %v826_v56 }
0x19c7   :  { %v849_v17 = vsub.f32 %v802_v34, %v841_v22 }
0x19c9   :  { %v857_v57 = vmul.f32 %v849_v17, %v849_v17 }
0x19cb   :  { %v879_v59 = vsel %vm228_vm5, %v857_v57, 0.0 }
0x19cc   :  { %880 = vadd.xlane.f32.xlu0 %v879_v59 }
0x19f7   :  { %v1456_v58 = vpop.permute.xlu1 %1455 }
0x19f8   :  { %v1458_v47 = vadd.f32 %v1456_v58, %v1084_v27 }
0x19fa   :  { %2005 = vtanh.f32 %v1458_v47 }
0x1a00   :  { %v2006_v60 = vpop.eup %2005 }
0x1a01   :  { %1462 = vrot.lane.b32.xlu1 %v2006_v60, %s2030_s6 }
0x1a2b   :  { %877 = vadd.xlane.f32.xlu1 %v876_v0 }
0x1a3f   :  { %v881_v13 = vpop.xlane.xlu0 %880 }
0x1a40   :  { %v889_v26 = vmul.f32 %v881_v13, %v2411_v37 }
0x1a42   :  { %v897_v16 = vadd.f32 1e-05, %v889_v26 }
0x1a44   :  { %2007 = vrsqrt.f32 %v897_v16  ;;  %vm974_vm8 = vweird.f32 %v897_v16 }
0x1a4a   :  { %v2008_v18 = vpop.eup %2007 }
0x1a4b   :  { %v969_v20 = vmul.f32 %v2008_v18, %v897_v16  ;;  %vm975_vm1 = vweird.f32 %v2008_v18 }
0x1a4c   :  { %vm976_vm9 = vmor %vm974_vm8, %vm975_vm1 }
0x1a4d   :  { %v970_v63 = vmul.f32 %v2008_v18, %v969_v20 }
0x1a4f   :  { %v971_v29 = vmul.f32 0.5, %v970_v63 }
0x1a51   :  { %v972_v46 = vsub.f32 1.5, %v971_v29 }
0x1a53   :  { %v973_v5 = vmul.f32 %v2008_v18, %v972_v46 }
0x1a55   :  { %v977_v14 = vsel %vm976_vm9, %v2008_v18, %v973_v5 }
0x1a56   :  { %v985_v23 = vmul.f32 %v977_v14, %v849_v17 }
0x1a58   :  { %v997_v34 = vmul.f32 %v2473_v15, %v985_v23 }
0x1a5a   :  { %v1009_v30 = vadd.f32 %v2481_v21, %v997_v34 }
0x1a73   :  { %v1463_v9 = vpop.permute.xlu1 %1462 }
0x1a74   :  { %v1465_v11 = vmul.f32 %v1463_v9, %v1460_v7 }
0x1a76   :  { %v2597_v12 = vadd.f32 %v1466_v10, %v1465_v11 }
0x1a78   :  { %v1468_v6 = vpack.c.bf16 %v2597_v12, %v2597_v12 }
0x1a7a   :  { %1470 = vrot.lane.b32.xlu2 %v1468_v6, %s2030_s6 }
0x1a9e   :  { %v878_v24 = vpop.xlane.xlu1 %877 }
0x1a9f   :  { %v888_v25 = vmul.f32 %v878_v24, %v2411_v37 }
0x1aa1   :  { %v896_v28 = vadd.f32 1e-05, %v888_v25 }
0x1aa3   :  { %2009 = vrsqrt.f32 %v896_v28  ;;  %vm964_vm11 = vweird.f32 %v896_v28 }
0x1aa9   :  { %v2010_v51 = vpop.eup %2009 }
0x1aaa   :  { %v959_v3 = vmul.f32 %v2010_v51, %v896_v28  ;;  %vm965_vm10 = vweird.f32 %v2010_v51 }
0x1aab   :  { %vm966_vm12 = vmor %vm964_vm11, %vm965_vm10  ;;  %vm1717_vm10 = vcmask 7168  }
0x1aac   :  { %v960_v35 = vmul.f32 %v2010_v51, %v959_v3 }
0x1aae   :  { %v961_v8 = vmul.f32 0.5, %v960_v35 }
0x1ab0   :  { %v962_v36 = vsub.f32 1.5, %v961_v8 }
0x1ab2   :  { %v963_v19 = vmul.f32 %v2010_v51, %v962_v36 }
0x1ab4   :  { %v967_v37 = vsel %vm966_vm12, %v2010_v51, %v963_v19 }
0x1ab5   :  { %v984_v4 = vmul.f32 %v967_v37, %v848_v62 }
0x1ab7   :  { %v996_v27 = vmul.f32 %v2473_v15, %v984_v4 }
0x1ab9   :  { %v1008_v38 = vadd.f32 %v2481_v21, %v996_v27 }
0x1abb   :  { %v1013_v39 = vpack.c.bf16 %v1009_v30, %v1008_v38 }
0x1abd   :  { %1828 = vmatmul.msk.bf16.gmra.mxu0 %vm228_vm5, %v1013_v39  ;;  %v2031_v39 = vmov 32.0  }
0x1ad4   :  { %v1471_v40 = vpop.permute.xlu2 %1470 }
0x1ad5   :  { %1848 = vmatmul.msk.bf16.vlgmr.msrb.gmra.mxu1 %vm294_vm15, %v1471_v40 }
0x1b3a   :  { %v1086_v48 = vpop.f32.mrf.mxu0 }
0x1b3b   :  { %v1087_v50 = vadd.f32 %v2492_v32, %v1086_v48 }
0x1b42   :  { %v1088_v26 = vpop.f32.mrf.mxu0 }
0x1b43   :  { %v1089_v16 = vadd.f32 %v2492_v32, %v1088_v26  ;;  %v22_v26 = vstv %s2673_s16 }
0x1b44   :  { %23 = vst [vmem:[#allocation3] sm:$0x1] %v22_v26 }
0x1b52   :  { %v1484_v41 = vpop.f32.mrf.mxu1 }
0x1b53   :  { %v1508_v43 = vadd.f32 %v1484_v41, %v2468_v33  ;;  %v1488_v15 = vadd.f32 %v1484_v41, %v1087_v50 }
0x1b55   :  { %1510 = vrot.lane.b32.xlu0 %v1508_v43, %s2028_s3  ;;  %v1849_v1 = vmul.f32 -1.442695, %v1488_v15 }
0x1b57   :  { %2011 = vpow2.f32 %v1849_v1 }
0x1b5a   :  { %v1486_v44 = vpop.f32.mrf.mxu1 }
0x1b5d   :  { %v2012_v2 = vpop.eup %2011 }
0x1b5e   :  { %v1492_v21 = vadd.f32 1.0, %v2012_v2 }
0x1b60   :  { %2013 = vrcp.f32 %v1492_v21  ;;  %v1504_v55 = vand.u32 2147483648, %v1492_v21  ;;  %vm1498_vm13 = vweird.f32 %v1492_v21  ;;  %v1502_v56 = vand.u32 2147483647, %v1492_v21 }
0x1b62   :  { %v1505_v17 = vor.u32 1.1754944e-38, %v1504_v55  ;;  %vm1503_vm2 = vcmp.eq.f32.partialorder %v1502_v56, 8.507059e+37 }
0x1b66   :  { %v2014_v31 = vpop.eup %2013 }
0x1b67   :  { %v1494_v52 = vmul.f32 %v2014_v31, %v1492_v21  ;;  %vm1499_vm5 = vweird.f32 %v2014_v31 }
0x1b68   :  { %vm1500_vm14 = vmor %vm1498_vm13, %vm1499_vm5 }
0x1b69   :  { %v1495_v42 = vsub.f32 1.0, %v1494_v52  ;;  %v1906_v52 = vld [vmem:[%s2669_s12] ss:$0 sm:$0xff] }
0x1b6b   :  { %v1496_v53 = vmul.f32 %v2014_v31, %v1495_v42 }
0x1b6d   :  { %v1497_v54 = vadd.f32 %v2014_v31, %v1496_v53 }
0x1b6f   :  { %v1501_v22 = vsel %vm1500_vm14, %v2014_v31, %v1497_v54  ;;  %v1905_v31 = vld [vmem:[%s2668_s11] ss:$0 sm:$0xff]  ;;  %v1891_v54 = vld [vmem:[%s2670_s13 + $0x8] sm:$0xff] }
0x1b70   :  { %v1506_v57 = vsel %vm1503_vm2, %v1505_v17, %v1501_v22  ;;  %1672 = vmatpush.bf16.msra.mxu3 %v1891_v54  ;;  %v1890_v22 = vld [vmem:[%s2670_s13] sm:$0xff] }
0x1b71   :  { %v1520_v45 = vsub.f32 1.0, %v1506_v57  ;;  %v1526_v49 = vmul.f32 %v1506_v57, %v2597_v12 }
0x1b74   :  { %1673 = vmatpush.bf16.msra.mxu3 %v1890_v22 }
0x1bc7   :  { %v1511_v59 = vpop.permute.xlu0 %1510 }
0x1bc8   :  { %v1513_v58 = vmul.f32 %v1511_v59, %v1506_v57 }
0x1bca   :  { %1515 = vrot.lane.b32.xlu1 %v1513_v58, %s2028_s3 }
0x1c3c   :  { %v1516_v47 = vpop.permute.xlu1 %1515 }
0x1c3d   :  { %v1518_v60 = vadd.f32 %v1516_v47, %v1087_v50 }
0x1c3f   :  { %2015 = vtanh.f32 %v1518_v60 }
0x1c45   :  { %v2016_v61 = vpop.eup %2015 }
0x1c46   :  { %1522 = vrot.lane.b32.xlu2 %v2016_v61, %s2030_s6 }
0x1ca0   :  { %v1523_v62 = vpop.permute.xlu2 %1522 }
0x1ca1   :  { %v1525_v0 = vmul.f32 %v1523_v62, %v1520_v45 }
0x1ca3   :  { %v1527_v7 = vadd.f32 %v1526_v49, %v1525_v0 }
0x1ca5   :  { %v1528_v9 = vpack.c.bf16 %v1527_v7, %v1527_v7 }
0x1ca7   :  { %1530 = vrot.lane.b32.xlu0 %v1528_v9, %s2030_s6 }
0x1d19   :  { %v1531_v10 = vpop.permute.xlu0 %1530 }
0x1d1a   :  { %1850 = vmatmul.msk.bf16.vlgmr.msra.gmra.mxu2 %vm294_vm15, %v1531_v10 }
0x1d9d   :  { %v1544_v11 = vpop.f32.mrf.mxu2 }
0x1d9e   :  { %v1568_v6 = vadd.f32 %v1544_v11, %v2468_v33  ;;  %v1548_v18 = vadd.f32 %v1544_v11, %v1089_v16  ;;  %v1893_v11 = vld [vmem:[%s2672_s15 + $0x8] sm:$0xff] }
0x1d9f   :  { %1710 = vmatpush.bf16.msra.mxu1 %v1893_v11 }
0x1da0   :  { %1570 = vrot.lane.b32.xlu2 %v1568_v6, %s2028_s3  ;;  %v1851_v20 = vmul.f32 -1.442695, %v1548_v18  ;;  %v1892_v6 = vld [vmem:[%s2672_s15] sm:$0xff] }
0x1da2   :  { %2017 = vpow2.f32 %v1851_v20 }
0x1da3   :  { %1711 = vmatpush.bf16.msra.mxu1 %v1892_v6 }
0x1da5   :  { %v1546_v13 = vpop.f32.mrf.mxu2 }
0x1da8   :  { %v2018_v12 = vpop.eup %2017 }
0x1da9   :  { %v1552_v63 = vadd.f32 1.0, %v2018_v12 }
0x1dab   :  { %2019 = vrcp.f32 %v1552_v63  ;;  %v1564_v51 = vand.u32 2147483648, %v1552_v63  ;;  %vm1558_vm3 = vweird.f32 %v1552_v63  ;;  %v1562_v33 = vand.u32 2147483647, %v1552_v63 }
0x1dad   :  { %v1565_v3 = vor.u32 1.1754944e-38, %v1564_v51  ;;  %vm1563_vm6 = vcmp.eq.f32.partialorder %v1562_v33, 8.507059e+37 }
0x1db1   :  { %v2020_v24 = vpop.eup %2019 }
0x1db2   :  { %v1554_v25 = vmul.f32 %v2020_v24, %v1552_v63  ;;  %vm1559_vm0 = vweird.f32 %v2020_v24 }
0x1db3   :  { %vm1560_vm4 = vmor %vm1558_vm3, %vm1559_vm0 }
0x1db4   :  { %v1555_v28 = vsub.f32 1.0, %v1554_v25  ;;  %v1908_v25 = vld [vmem:[#allocation3] ss:$0 sm:$0xff] }
0x1db6   :  { %v1556_v29 = vmul.f32 %v2020_v24, %v1555_v28 }
0x1db8   :  { %v1557_v46 = vadd.f32 %v2020_v24, %v1556_v29 }
0x1dba   :  { %v1561_v5 = vsel %vm1560_vm4, %v2020_v24, %v1557_v46 }
0x1dbb   :  { %v1566_v35 = vsel %vm1563_vm6, %v1565_v3, %v1561_v5 }
0x1dbc   :  { %v1580_v19 = vsub.f32 1.0, %v1566_v35  ;;  %v1586_v4 = vmul.f32 %v1566_v35, %v1527_v7 }
0x1dfa   :  { %v1571_v32 = vpop.permute.xlu2 %1570 }
0x1dfb   :  { %v1573_v14 = vmul.f32 %v1571_v32, %v1566_v35 }
0x1dfd   :  { %1575 = vrot.lane.b32.xlu0 %v1573_v14, %s2028_s3 }
0x1e6f   :  { %v1576_v8 = vpop.permute.xlu0 %1575 }
0x1e70   :  { %v1578_v36 = vadd.f32 %v1576_v8, %v1089_v16  ;;  %v1907_v16 = vld [vmem:[%s2671_s14] ss:$0 sm:$0xff] }
0x1e72   :  { %2021 = vtanh.f32 %v1578_v36 }
0x1e73   :  { %2023 = vrcp.f32 %v2031_v39 }
0x1e78   :  { %v2022_v23 = vpop.eup %2021 }
0x1e79   :  { %1582 = vrot.lane.b32.xlu1 %v2022_v23, %s2030_s6  ;;  %v2024_v40 = vpop.eup %2023 }
0x1e7a   :  { %v1596_v41 = vmul.f32 32.0, %v2024_v40  ;;  %vm1600_vm7 = vweird.f32 %v2024_v40 }
0x1e7c   :  { %v1597_v43 = vsub.f32 1.0, %v1596_v41 }
0x1e7e   :  { %v1598_v44 = vmul.f32 %v2024_v40, %v1597_v43 }
0x1e80   :  { %v1599_v48 = vadd.f32 %v2024_v40, %v1598_v44 }
0x1e82   :  { %v1601_v50 = vsel %vm1600_vm7, %v2024_v40, %v1599_v48 }
0x1eeb   :  { %v1583_v37 = vpop.permute.xlu1 %1582 }
0x1eec   :  { %v1585_v34 = vmul.f32 %v1583_v37, %v1580_v19 }
0x1eee   :  { %v1587_v27 = vadd.f32 %v1586_v4, %v1585_v34 }
0x1ef0   :  { %1589 = vrot.lane.b32.xlu2 %v1587_v27, %s2030_s6 }
0x1f4a   :  { %v1590_v38 = vpop.permute.xlu2 %1589 }
0x1f4b   :  { %v1592_v30 = vsel %vm294_vm15, %v1590_v38, 0.0 }
0x1f4c   :  { %1593 = vadd.xlane.f32.xlu0 %v1592_v30 }
0x1fbf   :  { %v1594_v15 = vpop.xlane.xlu0 %1593 }
0x1fc0   :  { %v1602_v1 = vmul.f32 %v1601_v50, %v1594_v15 }
0x1fc2   :  { %v1603_v2 = vsub.f32 %v1587_v27, %v1602_v1 }
0x1fc4   :  { %v1604_v21 = vmul.f32 %v1603_v2, %v1603_v2 }
0x1fc6   :  { %1606 = vrot.lane.b32.xlu1 %v1604_v21, %s2030_s6 }
0x1fce   :  { %1628 = vrot.lane.b32.xlu1 %v1905_v31, %s2032_s19 }
0x1fd6   :  { %1635 = vrot.lane.b32.xlu1 %v1906_v52, %s2032_s19 }
0x2038   :  { %v1607_v42 = vpop.permute.xlu1 %1606 }
0x2039   :  { %v1609_v53 = vsel %vm294_vm15, %v1607_v42, 0.0 }
0x203a   :  { %1610 = vadd.xlane.f32.xlu2 %v1609_v53 }
0x2040   :  { %v1629_v47 = vpop.permute.xlu1 %1628 }
0x2048   :  { %v1636_v0 = vpop.permute.xlu1 %1635 }
0x20ad   :  { %v1611_v55 = vpop.xlane.xlu2 %1610 }
0x20ae   :  { %v1612_v56 = vmul.f32 %v1611_v55, %v1601_v50 }
0x20b0   :  { %v1613_v17 = vadd.f32 1e-05, %v1612_v56 }
0x20b2   :  { %2025 = vrsqrt.f32 %v1613_v17  ;;  %vm1620_vm8 = vweird.f32 %v1613_v17 }
0x20b8   :  { %v2026_v57 = vpop.eup %2025 }
0x20b9   :  { %v1615_v59 = vmul.f32 %v2026_v57, %v1613_v17  ;;  %vm1621_vm1 = vweird.f32 %v2026_v57 }
0x20ba   :  { %vm1622_vm9 = vmor %vm1620_vm8, %vm1621_vm1 }
0x20bb   :  { %v1616_v58 = vmul.f32 %v2026_v57, %v1615_v59 }
0x20bd   :  { %v1617_v60 = vmul.f32 0.5, %v1616_v58 }
0x20bf   :  { %v1618_v61 = vsub.f32 1.5, %v1617_v60 }
0x20c1   :  { %v1619_v45 = vmul.f32 %v2026_v57, %v1618_v61 }
0x20c3   :  { %v1623_v62 = vsel %vm1622_vm9, %v2026_v57, %v1619_v45 }
0x20c4   :  { %v1624_v49 = vmul.f32 %v1623_v62, %v1603_v2 }
0x20c6   :  { %v1631_v7 = vmul.f32 %v1629_v47, %v1624_v49 }
0x20c8   :  { %v1638_v9 = vadd.f32 %v1636_v0, %v1631_v7 }
0x20ca   :  { %v1639_v10 = vpack.c.bf16 %v1638_v9, %v1638_v9 }
0x20cc   :  { %1649 = vrot.lane.b32.xlu1 %v1639_v10, %s2030_s6 }
0x213e   :  { %v1650_v13 = vpop.permute.xlu1 %1649 }
0x213f   :  { %1860 = vmatmul.msk.bf16.vlgmr.msra.gmra.mxu3 %vm294_vm15, %v1650_v13 }
0x21c2   :  { %v1675_v18 = vpop.f32.mrf.mxu3 }
0x21c3   :  { %v1676_v20 = vadd.f32 %v1907_v16, %v1675_v18 }
0x21c5   :  { %v1679_v12 = vmax.f32 %v1676_v20, 0.0 }
0x21c7   :  { %v1680_v63 = vpack.c.bf16 %v1679_v12, %v1679_v12 }
0x21c9   :  { %1869 = vmatmul.msk.bf16.vlgmr.msra.gmra.mxu1 %vm294_vm15, %v1680_v63 }
0x21ca   :  { %v1677_v24 = vpop.f32.mrf.mxu3 }
0x2246   :  { %v1713_v28 = vpop.f32.mrf.mxu1 }
0x2247   :  { %v1714_v29 = vadd.f32 %v1908_v25, %v1713_v28 }
0x2249   :  { %1718 = vst.msk [vmem:[%s2674_s17] sm:$0xff] %vm1717_vm10, %v1714_v29 }
0x224e   :  { %v1715_v46 = vpop.f32.mrf.mxu1 }

</bundles_post_ra>
